<compile_context>
chip_gen: v7x
topology: tpu7x:2x2x1
jax: 0.10.0
libtpu: 0.0.40
codegen_flags: <defaults>
</compile_context>

<pallas_src>
import functools

import jax
import jax.numpy as jnp
from jax.experimental import pallas as pl
from jax.experimental.pallas import tpu as pltpu

IN_FEATURES = 28 * 28          # 784
HIDDEN = 512
OUT_FEATURES = 10
K_PAD = 896                    # 7 * 128, lane-aligned K for layer 1
OUT_PAD = 128                  # lane-dense output width (sliced to 10 in wrapper)


def mlp_kernel(x_ref, w1_ref, b1_ref, w2_ref, b2_ref, o_ref):
    # Layer 1: (TM, 896) @ (896, 512) -> f32 accumulate, bias + ReLU in f32.
    h = jnp.dot(x_ref[...], w1_ref[...], preferred_element_type=jnp.float32)
    h = jnp.maximum(h + b1_ref[...], 0.0)
    # Layer 2: (TM, 512) @ (512, 128) -> f32 accumulate, bias, lane-dense store.
    h = h.astype(w2_ref.dtype)
    out = jnp.dot(h, w2_ref[...], preferred_element_type=jnp.float32)
    o_ref[...] = (out + b2_ref[...]).astype(o_ref.dtype)


@functools.partial(jax.jit, static_argnames=("tm",))
def mlp_forward(x_nchw, params, *, tm=256):
    """x_nchw: (N, 1, 28, 28) float32. Returns logits (N, 10) float32."""
    w1, b1, w2, b2 = params
    n = x_nchw.shape[0]

    # Flatten exactly like torch's x.view(-1, 784), pad K to 896 lanes and the
    # batch to a multiple of the row tile. Padded rows/cols are zero, so they
    # contribute nothing to the matmuls.
    x = x_nchw.reshape(n, IN_FEATURES).astype(jnp.float32)
    x = jnp.pad(x, ((0, 0), (0, K_PAD - IN_FEATURES)))
    n_pad = pl.cdiv(n, tm) * tm
    if n_pad != n:
        x = jnp.pad(x, ((0, n_pad - n), (0, 0)))
    x = x.astype(jnp.bfloat16)

    # Weights: bf16 for the MXU, zero-padded to lane-aligned shapes.
    w1p = jnp.pad(w1, ((0, K_PAD - IN_FEATURES), (0, 0))).astype(jnp.bfloat16)   # (896, 512)
    w2p = jnp.pad(w2, ((0, 0), (0, OUT_PAD - OUT_FEATURES))).astype(jnp.bfloat16)  # (512, 128)
    # Biases stay f32 (added post-accumulation).
    b1p = b1.reshape(1, HIDDEN).astype(jnp.float32)                               # (1, 512)
    b2p = jnp.pad(b2.reshape(1, OUT_FEATURES),
                  ((0, 0), (0, OUT_PAD - OUT_FEATURES))).astype(jnp.float32)      # (1, 128)

    grid = (n_pad // tm,)

    flops = 2 * n_pad * (K_PAD * HIDDEN + HIDDEN * OUT_PAD)
    bytes_accessed = (
        n_pad * K_PAD * 2                # x (bf16)
        + K_PAD * HIDDEN * 2             # w1 (bf16)
        + HIDDEN * OUT_PAD * 2           # w2 (bf16)
        + HIDDEN * 4 + OUT_PAD * 4       # biases (f32)
        + n_pad * OUT_PAD * 4            # output (f32)
    )

    out = pl.pallas_call(
        mlp_kernel,
        out_shape=jax.ShapeDtypeStruct((n_pad, OUT_PAD), jnp.float32),
        grid_spec=pltpu.PrefetchScalarGridSpec(
            num_scalar_prefetch=0,
            grid=grid,
            in_specs=[
                # Activation tile streams over the batch grid (double-buffered).
                pl.BlockSpec((tm, K_PAD), lambda i: (i, 0)),
                # Weights/biases: constant block index -> stay resident in VMEM.
                pl.BlockSpec((K_PAD, HIDDEN), lambda i: (0, 0)),
                pl.BlockSpec((1, HIDDEN), lambda i: (0, 0)),
                pl.BlockSpec((HIDDEN, OUT_PAD), lambda i: (0, 0)),
                pl.BlockSpec((1, OUT_PAD), lambda i: (0, 0)),
            ],
            out_specs=pl.BlockSpec((tm, OUT_PAD), lambda i: (i, 0)),
        ),
        compiler_params=pltpu.CompilerParams(
            dimension_semantics=("parallel",),   # shard batch tiles across TCs on v7x
        ),
        cost_estimate=pl.CostEstimate(
            flops=flops, transcendentals=0, bytes_accessed=bytes_accessed),
    )(x, w1p, b1p, w2p, b2p)

    # Drop batch padding and the lane padding of the 10-wide logits.
    return out[:n, :OUT_FEATURES]


def init_params(key):
    """Deterministic init matching nn.Linear shapes (weights kept transposed)."""
    k1, k2, k3, k4 = jax.random.split(key, 4)

    def linear_init(kw, kb, fan_in, fan_out):
        bound = 1.0 / jnp.sqrt(fan_in)
        w = jax.random.uniform(kw, (fan_in, fan_out), jnp.float32, -bound, bound)
        b = jax.random.uniform(kb, (1, fan_out), jnp.float32, -bound, bound)
        return w, b

    w1, b1 = linear_init(k1, k2, IN_FEATURES, HIDDEN)
    w2, b2 = linear_init(k3, k4, HIDDEN, OUT_FEATURES)
    return (w1, b1, w2, b2)


if __name__ == "__main__":
    key = jax.random.PRNGKey(0)
    kx, kp = jax.random.split(key)

    batch = 8
    x = jax.random.normal(kx, (batch, 1, 28, 28), jnp.float32)
    params = init_params(kp)

    logits = mlp_forward(x, params)
    jax.block_until_ready(logits)
    assert logits.shape == (batch, OUT_FEATURES)

    # Plain-JAX reference using the same bf16-input / f32-accumulate math.
    w1, b1, w2, b2 = params
    xf = x.reshape(batch, IN_FEATURES)
    h = jnp.dot(xf.astype(jnp.bfloat16), w1.astype(jnp.bfloat16),
                preferred_element_type=jnp.float32) + b1
    h = jnp.maximum(h, 0.0)
    ref = jnp.dot(h.astype(jnp.bfloat16), w2.astype(jnp.bfloat16),
                  preferred_element_type=jnp.float32) + b2

    assert jnp.allclose(logits, ref, atol=1e-2, rtol=1e-2), (
        float(jnp.max(jnp.abs(logits - ref))))

    print("KERNEL_OK")
</pallas_src>

<mosaic_0001>
module attributes {stable_mosaic.version = 11 : i64} {
  func.func @mlp_kernel(%arg0: i32, %arg1: memref<256x896xbf16, #tpu.memory_space<vmem>>, %arg2: memref<896x512xbf16, #tpu.memory_space<vmem>>, %arg3: memref<1x512xf32, #tpu.memory_space<vmem>>, %arg4: memref<512x128xbf16, #tpu.memory_space<vmem>>, %arg5: memref<1x128xf32, #tpu.memory_space<vmem>>, %arg6: memref<256x128xf32, #tpu.memory_space<vmem>>) attributes {dimension_semantics = [#tpu.dimension_semantics<parallel>], iteration_bounds = array<i64: 1>, scalar_prefetch = 0 : i64, scratch_operands = 0 : i64, tpu.core_type = #tpu.core_type<tc>, window_params = [{transform_indices = @transform_0, window_bounds = array<i64: 256, 896>}, {pipeline_mode = #tpu.pipeline_mode<synchronous>, transform_indices = @transform_1, window_bounds = array<i64: 896, 512>}, {pipeline_mode = #tpu.pipeline_mode<synchronous>, transform_indices = @transform_2, window_bounds = array<i64: 1, 512>}, {pipeline_mode = #tpu.pipeline_mode<synchronous>, transform_indices = @transform_3, window_bounds = array<i64: 512, 128>}, {pipeline_mode = #tpu.pipeline_mode<synchronous>, transform_indices = @transform_4, window_bounds = array<i64: 1, 128>}, {transform_indices = @transform_5, window_bounds = array<i64: 256, 128>}]} {
    %c0 = arith.constant 0 : index
    %c0_0 = arith.constant 0 : index
    %0 = vector.load %arg1[%c0, %c0_0] : memref<256x896xbf16, #tpu.memory_space<vmem>>, vector<256x896xbf16>
    %c0_1 = arith.constant 0 : index
    %c0_2 = arith.constant 0 : index
    %1 = vector.load %arg2[%c0_1, %c0_2] : memref<896x512xbf16, #tpu.memory_space<vmem>>, vector<896x512xbf16>
    %cst = arith.constant dense<0.000000e+00> : vector<256x512xf32>
    %2 = tpu.matmul %0, %1, %cst {dimension_numbers = #tpu.dot_dimension_numbers<[1], [0], [0], [1], [0, 0, 1, 1], [], []>} : vector<256x896xbf16>, vector<896x512xbf16>, vector<256x512xf32> -> vector<256x512xf32>
    %c0_3 = arith.constant 0 : index
    %c0_4 = arith.constant 0 : index
    %3 = vector.load %arg3[%c0_3, %c0_4] : memref<1x512xf32, #tpu.memory_space<vmem>>, vector<1x512xf32>
    %4 = vector.broadcast %3 : vector<1x512xf32> to vector<256x512xf32>
    %5 = arith.addf %2, %4 : vector<256x512xf32>
    %cst_5 = arith.constant 0.000000e+00 : f32
    %6 = vector.broadcast %cst_5 : f32 to vector<256x512xf32>
    %7 = arith.maximumf %5, %6 : vector<256x512xf32>
    %8 = arith.truncf %7 : vector<256x512xf32> to vector<256x512xbf16>
    %c0_6 = arith.constant 0 : index
    %c0_7 = arith.constant 0 : index
    %9 = vector.load %arg4[%c0_6, %c0_7] : memref<512x128xbf16, #tpu.memory_space<vmem>>, vector<512x128xbf16>
    %cst_8 = arith.constant dense<0.000000e+00> : vector<256x128xf32>
    %10 = tpu.matmul %8, %9, %cst_8 {dimension_numbers = #tpu.dot_dimension_numbers<[1], [0], [0], [1], [0, 0, 1, 1], [], []>} : vector<256x512xbf16>, vector<512x128xbf16>, vector<256x128xf32> -> vector<256x128xf32>
    %c0_9 = arith.constant 0 : index
    %c0_10 = arith.constant 0 : index
    %11 = vector.load %arg5[%c0_9, %c0_10] : memref<1x128xf32, #tpu.memory_space<vmem>>, vector<1x128xf32>
    %12 = vector.broadcast %11 : vector<1x128xf32> to vector<256x128xf32>
    %13 = arith.addf %10, %12 : vector<256x128xf32>
    %c0_11 = arith.constant 0 : index
    %c0_12 = arith.constant 0 : index
    %14 = vector.load %arg6[%c0_11, %c0_12] : memref<256x128xf32, #tpu.memory_space<vmem>>, vector<256x128xf32>
    tpu.vector_store %arg6[%c0_11, %c0_12], %13 {strides = array<i32>} : memref<256x128xf32, #tpu.memory_space<vmem>>, vector<256x128xf32>,
    return
  }
  func.func @transform_0(%arg0: i32) -> (i32, i32) {
    %c0_i32 = arith.constant 0 : i32
    %c0_i32_0 = arith.constant 0 : i32
    return %arg0, %c0_i32 : i32, i32
  }
  func.func @transform_1(%arg0: i32) -> (i32, i32) {
    %c0_i32 = arith.constant 0 : i32
    %c0_i32_0 = arith.constant 0 : i32
    %c0_i32_1 = arith.constant 0 : i32
    return %c0_i32, %c0_i32_0 : i32, i32
  }
  func.func @transform_2(%arg0: i32) -> (i32, i32) {
    %c0_i32 = arith.constant 0 : i32
    %c0_i32_0 = arith.constant 0 : i32
    %c0_i32_1 = arith.constant 0 : i32
    return %c0_i32, %c0_i32_0 : i32, i32
  }
  func.func @transform_3(%arg0: i32) -> (i32, i32) {
    %c0_i32 = arith.constant 0 : i32
    %c0_i32_0 = arith.constant 0 : i32
    %c0_i32_1 = arith.constant 0 : i32
    return %c0_i32, %c0_i32_0 : i32, i32
  }
  func.func @transform_4(%arg0: i32) -> (i32, i32) {
    %c0_i32 = arith.constant 0 : i32
    %c0_i32_0 = arith.constant 0 : i32
    %c0_i32_1 = arith.constant 0 : i32
    return %c0_i32, %c0_i32_0 : i32, i32
  }
  func.func @transform_5(%arg0: i32) -> (i32, i32) {
    %c0_i32 = arith.constant 0 : i32
    %c0_i32_0 = arith.constant 0 : i32
    return %arg0, %c0_i32 : i32, i32
  }
}

</mosaic_0001>

<bundles_post_ra>
// kernel: mlp_forward.1
= control target key start
LH: loop header
LB: loop body
LE: loop exit
PB: predicated region body
PF: predicated region fallthrough
CT: control target
= control target key end

     0   :  { %s7521_s1 = inlined_call_operand.vmem [shape: bf16[896,512], index: 1, kind: input, shape index: {}]   ;;  %s7522_s0 = inlined_call_operand.vmem [shape: bf16[256,896], index: 0, kind: input, shape index: {}]   ;;  %s7523_s3 = inlined_call_operand.vmem [shape: bf16[512,128], index: 3, kind: input, shape index: {}]   ;;  %s7524_s2 = inlined_call_operand.vmem [shape: f32[1,512], index: 2, kind: input, shape index: {}]   ;;  %s7525_s4 = inlined_call_operand.vmem [shape: f32[1,128], index: 4, kind: input, shape index: {}]   ;;  %s7526_s5 = inlined_call_operand.vmem [shape: f32[256,128], index: 5, kind: output, shape index: {}]  }
   0x1   :  { %v5554_v0 = vld [vmem:[%s7521_s1 + $0x4] ss:$16 sps:$4 sm:$0xff]   ;;  %v5556_v1 = vld [vmem:[%s7521_s1 + $0xc] ss:$16 sps:$4 sm:$0xff]   ;;  %v5558_v2 = vld [vmem:[%s7521_s1] ss:$16 sps:$4 sm:$0xff]  }
   0x2   :  { %2091 = vmatprep.subr.bf16.mxu0 %v5554_v0  ;;  %v5559_v3 = vld [vmem:[%s7521_s1 + $0x8] ss:$16 sps:$4 sm:$0xff]   ;;  %2863 = vmatprep.subr.bf16.mxu1 %v5556_v1  ;;  %v5560_v4 = vld [vmem:[%s7521_s1 + $0x24] ss:$16 sps:$4 sm:$0xff]   ;;  %v5562_v5 = vld [vmem:[%s7521_s1 + $0x2c] ss:$16 sps:$4 sm:$0xff]  }
   0x3   :  { %2092 = vmatpush1.bf16.msra.mxu0 %v5558_v2  ;;  %2864 = vmatpush1.bf16.msra.mxu1 %v5559_v3  ;;  %v5564_v6 = vld [vmem:[%s7521_s1 + $0x20] ss:$16 sps:$4 sm:$0xff]   ;;  %v5565_v7 = vld [vmem:[%s7521_s1 + $0x28] ss:$16 sps:$4 sm:$0xff]   ;;  %v5566_v8 = vld [vmem:[%s7521_s1 + $0x44] ss:$16 sps:$4 sm:$0xff]  }
   0x4   :  { %2093 = vmatprep.subr.bf16.mxu0 %v5560_v4  ;;  %2865 = vmatprep.subr.bf16.mxu1 %v5562_v5  ;;  %v5568_v9 = vld [vmem:[%s7521_s1 + $0x4c] ss:$16 sps:$4 sm:$0xff]   ;;  %v5570_v10 = vld [vmem:[%s7521_s1 + $0x40] ss:$16 sps:$4 sm:$0xff]   ;;  %v5571_v11 = vld [vmem:[%s7521_s1 + $0x48] ss:$16 sps:$4 sm:$0xff]  }
   0x5   :  { %v5572_v12 = vld [vmem:[%s7521_s1 + $0x64] ss:$16 sps:$4 sm:$0xff]   ;;  %v5574_v13 = vld [vmem:[%s7521_s1 + $0x6c] ss:$16 sps:$4 sm:$0xff]   ;;  %v5576_v14 = vld [vmem:[%s7521_s1 + $0x60] ss:$16 sps:$4 sm:$0xff]  }
   0x6   :  { %v5577_v15 = vld [vmem:[%s7521_s1 + $0x68] ss:$16 sps:$4 sm:$0xff]   ;;  %v5578_v16 = vld [vmem:[%s7521_s1 + $0x84] ss:$16 sps:$4 sm:$0xff]   ;;  %v5580_v17 = vld [vmem:[%s7521_s1 + $0x8c] ss:$16 sps:$4 sm:$0xff]  }
   0x7   :  { %2094 = vmatpush1.bf16.msra.mxu0 %v5564_v6  ;;  %2866 = vmatpush1.bf16.msra.mxu1 %v5565_v7  ;;  %v5582_v18 = vld [vmem:[%s7521_s1 + $0x80] ss:$16 sps:$4 sm:$0xff]   ;;  %v5583_v19 = vld [vmem:[%s7521_s1 + $0x88] ss:$16 sps:$4 sm:$0xff]   ;;  %v5584_v20 = vld [vmem:[%s7521_s1 + $0xa4] ss:$16 sps:$4 sm:$0xff]  }
   0x8   :  { %2095 = vmatprep.subr.bf16.mxu0 %v5566_v8  ;;  %2867 = vmatprep.subr.bf16.mxu1 %v5568_v9  ;;  %v5586_v21 = vld [vmem:[%s7521_s1 + $0xac] ss:$16 sps:$4 sm:$0xff]   ;;  %v5588_v22 = vld [vmem:[%s7521_s1 + $0xa0] ss:$16 sps:$4 sm:$0xff]   ;;  %v5589_v23 = vld [vmem:[%s7521_s1 + $0xa8] ss:$16 sps:$4 sm:$0xff]  }
   0x9   :  { %v5590_v24 = vld [vmem:[%s7521_s1 + $0xc4] ss:$16 sps:$4 sm:$0xff]   ;;  %v5592_v25 = vld [vmem:[%s7521_s1 + $0xcc] ss:$16 sps:$4 sm:$0xff]   ;;  %v5594_v26 = vld [vmem:[%s7521_s1 + $0xc0] ss:$16 sps:$4 sm:$0xff]  }
   0xa   :  { %v5595_v27 = vld [vmem:[%s7521_s1 + $0xc8] ss:$16 sps:$4 sm:$0xff]   ;;  %v5596_v28 = vld [vmem:[%s7521_s1 + $0xe4] ss:$16 sps:$4 sm:$0xff]   ;;  %v5598_v29 = vld [vmem:[%s7521_s1 + $0xec] ss:$16 sps:$4 sm:$0xff]  }
   0xb   :  { %2096 = vmatpush1.bf16.msra.mxu0 %v5570_v10  ;;  %2868 = vmatpush1.bf16.msra.mxu1 %v5571_v11  ;;  %v5600_v30 = vld [vmem:[%s7521_s1 + $0xe0] ss:$16 sps:$4 sm:$0xff]   ;;  %v5601_v31 = vld [vmem:[%s7521_s1 + $0xe8] ss:$16 sps:$4 sm:$0xff]   ;;  %v5602_v32 = vld [vmem:[%s7521_s1 + $0x104] ss:$16 sps:$4 sm:$0xff]  }
   0xc   :  { %2097 = vmatprep.subr.bf16.mxu0 %v5572_v12  ;;  %2869 = vmatprep.subr.bf16.mxu1 %v5574_v13  ;;  %v5604_v33 = vld [vmem:[%s7521_s1 + $0x10c] ss:$16 sps:$4 sm:$0xff]   ;;  %v5606_v34 = vld [vmem:[%s7521_s1 + $0x100] ss:$16 sps:$4 sm:$0xff]   ;;  %v5607_v35 = vld [vmem:[%s7521_s1 + $0x108] ss:$16 sps:$4 sm:$0xff]  }
   0xd   :  { %v5608_v36 = vld [vmem:[%s7521_s1 + $0x124] ss:$16 sps:$4 sm:$0xff]   ;;  %v5610_v37 = vld [vmem:[%s7521_s1 + $0x12c] ss:$16 sps:$4 sm:$0xff]   ;;  %v5612_v38 = vld [vmem:[%s7521_s1 + $0x120] ss:$16 sps:$4 sm:$0xff]  }
   0xe   :  { %v5613_v39 = vld [vmem:[%s7521_s1 + $0x128] ss:$16 sps:$4 sm:$0xff]   ;;  %v5614_v40 = vld [vmem:[%s7521_s1 + $0x144] ss:$16 sps:$4 sm:$0xff]   ;;  %v5616_v41 = vld [vmem:[%s7521_s1 + $0x14c] ss:$16 sps:$4 sm:$0xff]  }
   0xf   :  { %2098 = vmatpush1.bf16.msra.mxu0 %v5576_v14  ;;  %2870 = vmatpush1.bf16.msra.mxu1 %v5577_v15  ;;  %v5618_v42 = vld [vmem:[%s7521_s1 + $0x140] ss:$16 sps:$4 sm:$0xff]   ;;  %v5619_v43 = vld [vmem:[%s7521_s1 + $0x148] ss:$16 sps:$4 sm:$0xff]   ;;  %v5620_v44 = vld [vmem:[%s7521_s1 + $0x164] ss:$16 sps:$4 sm:$0xff]  }
  0x10   :  { %2099 = vmatprep.subr.bf16.mxu0 %v5578_v16  ;;  %2871 = vmatprep.subr.bf16.mxu1 %v5580_v17  ;;  %v5622_v45 = vld [vmem:[%s7521_s1 + $0x16c] ss:$16 sps:$4 sm:$0xff]   ;;  %v5624_v46 = vld [vmem:[%s7521_s1 + $0x160] ss:$16 sps:$4 sm:$0xff]   ;;  %v5625_v47 = vld [vmem:[%s7521_s1 + $0x168] ss:$16 sps:$4 sm:$0xff]  }
  0x11   :  { %v5652_v48 = vld [vmem:[%s7522_s0 + $0x4] ss:$28 sps:$4 sm:$0xff]   ;;  %v5628_v50 = vld [vmem:[%s7521_s1 + $0x18c] ss:$16 sps:$4 sm:$0xff]   ;;  %v5631_v52 = vld [vmem:[%s7521_s1 + $0x188] ss:$16 sps:$4 sm:$0xff]  }
  0x12   :  { %v5626_v49 = vld [vmem:[%s7521_s1 + $0x184] ss:$16 sps:$4 sm:$0xff]   ;;  %2123 = vmatprep.mubr.bf16.mxu0 %v5652_v48  ;;  %2895 = vmatprep.mubr.bf16.mxu1 %v5652_v48  ;;  %v5630_v51 = vld [vmem:[%s7521_s1 + $0x180] ss:$16 sps:$4 sm:$0xff]   ;;  %v5634_v54 = vld [vmem:[%s7521_s1 + $0x1ac] ss:$16 sps:$4 sm:$0xff]  }
  0x13   :  { %2100 = vmatpush1.bf16.msra.mxu0 %v5582_v18  ;;  %2872 = vmatpush1.bf16.msra.mxu1 %v5583_v19  ;;  %v5632_v53 = vld [vmem:[%s7521_s1 + $0x1a4] ss:$16 sps:$4 sm:$0xff]   ;;  %v5636_v55 = vld [vmem:[%s7521_s1 + $0x1a0] ss:$16 sps:$4 sm:$0xff]   ;;  %v5637_v56 = vld [vmem:[%s7521_s1 + $0x1a8] ss:$16 sps:$4 sm:$0xff]  }
  0x14   :  { %2101 = vmatprep.subr.bf16.mxu0 %v5584_v20  ;;  %2873 = vmatprep.subr.bf16.mxu1 %v5586_v21  ;;  %v5638_v57 = vld [vmem:[%s7521_s1 + $0x1c4] ss:$16 sps:$4 sm:$0xff]   ;;  %v5640_v58 = vld [vmem:[%s7521_s1 + $0x1cc] ss:$16 sps:$4 sm:$0xff]   ;;  %v5642_v59 = vld [vmem:[%s7521_s1 + $0x1c0] ss:$16 sps:$4 sm:$0xff]  }
  0x15   :  { %v5643_v60 = vld [vmem:[%s7521_s1 + $0x1c8] ss:$16 sps:$4 sm:$0xff]   ;;  %v5644_v61 = vld [vmem:[%s7521_s1 + $0x1e4] ss:$16 sps:$4 sm:$0xff]   ;;  %v5646_v62 = vld [vmem:[%s7521_s1 + $0x1ec] ss:$16 sps:$4 sm:$0xff]  }
  0x16   :  { %v5648_v63 = vld [vmem:[%s7521_s1 + $0x1e0] ss:$16 sps:$4 sm:$0xff]   ;;  %v5649_v0 = vld [vmem:[%s7521_s1 + $0x1e8] ss:$16 sps:$4 sm:$0xff]   ;;  %v5655_v1 = vld [vmem:[%s7521_s1 + $0x204] ss:$16 sps:$4 sm:$0xff]  }
  0x17   :  { %2102 = vmatpush1.bf16.msra.mxu0 %v5588_v22  ;;  %2874 = vmatpush1.bf16.msra.mxu1 %v5589_v23  ;;  %v5658_v2 = vld [vmem:[%s7521_s1 + $0x20c] ss:$16 sps:$4 sm:$0xff]   ;;  %v5653_v4 = vld [vmem:[%s7521_s1 + $0x200] ss:$16 sps:$4 sm:$0xff]   ;;  %v5656_v5 = vld [vmem:[%s7521_s1 + $0x208] ss:$16 sps:$4 sm:$0xff]  }
  0x18   :  { %2103 = vmatprep.subr.bf16.mxu0 %v5590_v24  ;;  %2875 = vmatprep.subr.bf16.mxu1 %v5592_v25  ;;  %v5650_v3 = vld [vmem:[%s7522_s0] ss:$28 sps:$4 sm:$0xff]   ;;  %v5664_v7 = vld [vmem:[%s7521_s1 + $0x224] ss:$16 sps:$4 sm:$0xff]   ;;  %v5665_v10 = vld [vmem:[%s7521_s1 + $0x228] ss:$16 sps:$4 sm:$0xff]  }
  0x19   :  { %v5659_v6 = vld [vmem:[%s7522_s0 + $0x3c] ss:$28 sps:$4 sm:$0xff]   ;;  %v5662_v9 = vld [vmem:[%s7521_s1 + $0x220] ss:$16 sps:$4 sm:$0xff]   ;;  %v5673_v11 = vld [vmem:[%s7521_s1 + $0x244] ss:$16 sps:$4 sm:$0xff]  }
  0x1a   :  { %v5667_v8 = vld [vmem:[%s7521_s1 + $0x22c] ss:$16 sps:$4 sm:$0xff]   ;;  %v5661_v13 = vld [vmem:[%s7522_s0 + $0x38] ss:$28 sps:$4 sm:$0xff]   ;;  %v5671_v15 = vld [vmem:[%s7521_s1 + $0x240] ss:$16 sps:$4 sm:$0xff]  }
  0x1b   :  { %2104 = vmatpush1.bf16.msra.mxu0 %v5594_v26  ;;  %2876 = vmatpush1.bf16.msra.mxu1 %v5595_v27  ;;  %v5676_v12 = vld [vmem:[%s7521_s1 + $0x24c] ss:$16 sps:$4 sm:$0xff]   ;;  %v5668_v14 = vld [vmem:[%s7522_s0 + $0x74] ss:$28 sps:$4 sm:$0xff]   ;;  %v5674_v16 = vld [vmem:[%s7521_s1 + $0x248] ss:$16 sps:$4 sm:$0xff]  }
  0x1c   :  { %2105 = vmatprep.subr.bf16.mxu0 %v5596_v28  ;;  %2877 = vmatprep.subr.bf16.mxu1 %v5598_v29  ;;  %v5682_v17 = vld [vmem:[%s7521_s1 + $0x264] ss:$16 sps:$4 sm:$0xff]   ;;  %v5685_v18 = vld [vmem:[%s7521_s1 + $0x26c] ss:$16 sps:$4 sm:$0xff]   ;;  %v5680_v19 = vld [vmem:[%s7521_s1 + $0x260] ss:$16 sps:$4 sm:$0xff]  }
  0x1d   :  { %v5683_v20 = vld [vmem:[%s7521_s1 + $0x268] ss:$16 sps:$4 sm:$0xff]   ;;  %v5691_v21 = vld [vmem:[%s7521_s1 + $0x284] ss:$16 sps:$4 sm:$0xff]   ;;  %v5694_v22 = vld [vmem:[%s7521_s1 + $0x28c] ss:$16 sps:$4 sm:$0xff]  }
  0x1e   :  { %v5670_v23 = vld [vmem:[%s7522_s0 + $0x70] ss:$28 sps:$4 sm:$0xff]   ;;  %v5692_v26 = vld [vmem:[%s7521_s1 + $0x288] ss:$16 sps:$4 sm:$0xff]   ;;  %v5700_v27 = vld [vmem:[%s7521_s1 + $0x2a4] ss:$16 sps:$4 sm:$0xff]  }
  0x1f   :  { %2106 = vmatpush1.bf16.msra.mxu0 %v5600_v30  ;;  %2878 = vmatpush1.bf16.msra.mxu1 %v5601_v31  ;;  %v5677_v24 = vld [vmem:[%s7522_s0 + $0xac] ss:$28 sps:$4 sm:$0xff]   ;;  %v5689_v25 = vld [vmem:[%s7521_s1 + $0x280] ss:$16 sps:$4 sm:$0xff]   ;;  %v5709_v31 = vld [vmem:[%s7521_s1 + $0x2c4] ss:$16 sps:$4 sm:$0xff]  }
  0x20   :  { %2107 = vmatprep.subr.bf16.mxu0 %v5602_v32  ;;  %2879 = vmatprep.subr.bf16.mxu1 %v5604_v33  ;;  %v5703_v28 = vld [vmem:[%s7521_s1 + $0x2ac] ss:$16 sps:$4 sm:$0xff]   ;;  %v5698_v29 = vld [vmem:[%s7521_s1 + $0x2a0] ss:$16 sps:$4 sm:$0xff]   ;;  %v5701_v30 = vld [vmem:[%s7521_s1 + $0x2a8] ss:$16 sps:$4 sm:$0xff]  }
  0x21   :  { %v5712_v32 = vld [vmem:[%s7521_s1 + $0x2cc] ss:$16 sps:$4 sm:$0xff]   ;;  %v5679_v33 = vld [vmem:[%s7522_s0 + $0xa8] ss:$28 sps:$4 sm:$0xff]  }
  0x22   :  { %v5739_v48 = vld [vmem:[%s7521_s1 + $0x32c] ss:$16 sps:$4 sm:$0xff]  }
  0x23   :  { %2108 = vmatpush1.bf16.msra.mxu0 %v5606_v34  ;;  %2880 = vmatpush1.bf16.msra.mxu1 %v5607_v35  ;;  %v5686_v34 = vld [vmem:[%s7522_s0 + $0xe4] ss:$28 sps:$4 sm:$0xff]  }
  0x24   :  { %2109 = vmatprep.subr.bf16.mxu0 %v5608_v36  ;;  %2881 = vmatprep.subr.bf16.mxu1 %v5610_v37  ;;  %v5707_v35 = vld [vmem:[%s7521_s1 + $0x2c0] ss:$16 sps:$4 sm:$0xff]   ;;  %v5710_v36 = vld [vmem:[%s7521_s1 + $0x2c8] ss:$16 sps:$4 sm:$0xff]   ;;  %v5718_v37 = vld [vmem:[%s7521_s1 + $0x2e4] ss:$16 sps:$4 sm:$0xff]  }
  0x27   :  { %2110 = vmatpush1.bf16.msra.mxu0 %v5612_v38  ;;  %2882 = vmatpush1.bf16.msra.mxu1 %v5613_v39  ;;  %v5721_v38 = vld [vmem:[%s7521_s1 + $0x2ec] ss:$16 sps:$4 sm:$0xff]   ;;  %v5716_v39 = vld [vmem:[%s7521_s1 + $0x2e0] ss:$16 sps:$4 sm:$0xff]  }
  0x28   :  { %2111 = vmatprep.subr.bf16.mxu0 %v5614_v40  ;;  %2883 = vmatprep.subr.bf16.mxu1 %v5616_v41  ;;  %v5719_v40 = vld [vmem:[%s7521_s1 + $0x2e8] ss:$16 sps:$4 sm:$0xff]   ;;  %v5727_v41 = vld [vmem:[%s7521_s1 + $0x304] ss:$16 sps:$4 sm:$0xff]  }
  0x2b   :  { %2112 = vmatpush1.bf16.msra.mxu0 %v5618_v42  ;;  %2884 = vmatpush1.bf16.msra.mxu1 %v5619_v43  ;;  %v5730_v42 = vld [vmem:[%s7521_s1 + $0x30c] ss:$16 sps:$4 sm:$0xff]  }
  0x2c   :  { %2113 = vmatprep.subr.bf16.mxu0 %v5620_v44  ;;  %2885 = vmatprep.subr.bf16.mxu1 %v5622_v45  ;;  %v5688_v43 = vld [vmem:[%s7522_s0 + $0xe0] ss:$28 sps:$4 sm:$0xff]  }
  0x2d   :  { %v5695_v44 = vld [vmem:[%s7522_s0 + $0x11c] ss:$28 sps:$4 sm:$0xff]   ;;  %v5725_v45 = vld [vmem:[%s7521_s1 + $0x300] ss:$16 sps:$4 sm:$0xff]  }
  0x2f   :  { %2114 = vmatpush1.bf16.msra.mxu0 %v5624_v46  ;;  %2886 = vmatpush1.bf16.msra.mxu1 %v5625_v47  ;;  %v5728_v46 = vld [vmem:[%s7521_s1 + $0x308] ss:$16 sps:$4 sm:$0xff]   ;;  %v5736_v47 = vld [vmem:[%s7521_s1 + $0x324] ss:$16 sps:$4 sm:$0xff]  }
  0x30   :  { %2115 = vmatprep.subr.bf16.mxu0 %v5626_v49  ;;  %2887 = vmatprep.subr.bf16.mxu1 %v5628_v50  ;;  %v5734_v49 = vld [vmem:[%s7521_s1 + $0x320] ss:$16 sps:$4 sm:$0xff]   ;;  %v5737_v50 = vld [vmem:[%s7521_s1 + $0x328] ss:$16 sps:$4 sm:$0xff]  }
  0x33   :  { %2116 = vmatpush1.bf16.msra.mxu0 %v5630_v51  ;;  %2888 = vmatpush1.bf16.msra.mxu1 %v5631_v52  ;;  %v5745_v51 = vld [vmem:[%s7521_s1 + $0x344] ss:$16 sps:$4 sm:$0xff]   ;;  %v5748_v52 = vld [vmem:[%s7521_s1 + $0x34c] ss:$16 sps:$4 sm:$0xff]  }
  0x34   :  { %2117 = vmatprep.subr.bf16.mxu0 %v5632_v53  ;;  %2889 = vmatprep.subr.bf16.mxu1 %v5634_v54  ;;  %v5697_v53 = vld [vmem:[%s7522_s0 + $0x118] ss:$28 sps:$4 sm:$0xff]  }
  0x35   :  { %v5704_v54 = vld [vmem:[%s7522_s0 + $0x154] ss:$28 sps:$4 sm:$0xff]  }
  0x37   :  { %2118 = vmatpush1.bf16.msra.mxu0 %v5636_v55  ;;  %2890 = vmatpush1.bf16.msra.mxu1 %v5637_v56  ;;  %v5743_v55 = vld [vmem:[%s7521_s1 + $0x340] ss:$16 sps:$4 sm:$0xff]   ;;  %v5746_v56 = vld [vmem:[%s7521_s1 + $0x348] ss:$16 sps:$4 sm:$0xff]  }
  0x38   :  { %2119 = vmatprep.subr.bf16.mxu0 %v5638_v57  ;;  %2891 = vmatprep.subr.bf16.mxu1 %v5640_v58  ;;  %v5754_v57 = vld [vmem:[%s7521_s1 + $0x364] ss:$16 sps:$4 sm:$0xff]   ;;  %v5757_v58 = vld [vmem:[%s7521_s1 + $0x36c] ss:$16 sps:$4 sm:$0xff]  }
  0x3b   :  { %2120 = vmatpush1.bf16.msra.mxu0 %v5642_v59  ;;  %2892 = vmatpush1.bf16.msra.mxu1 %v5643_v60  ;;  %v5752_v59 = vld [vmem:[%s7521_s1 + $0x360] ss:$16 sps:$4 sm:$0xff]   ;;  %v5755_v60 = vld [vmem:[%s7521_s1 + $0x368] ss:$16 sps:$4 sm:$0xff]  }
  0x3c   :  { %2121 = vmatprep.subr.bf16.mxu0 %v5644_v61  ;;  %2893 = vmatprep.subr.bf16.mxu1 %v5646_v62  ;;  %v5763_v61 = vld [vmem:[%s7521_s1 + $0x384] ss:$16 sps:$4 sm:$0xff]   ;;  %v5766_v62 = vld [vmem:[%s7521_s1 + $0x38c] ss:$16 sps:$4 sm:$0xff]  }
  0x3f   :  { %2122 = vmatpush1.bf16.msra.mxu0 %v5648_v63  ;;  %2894 = vmatpush1.bf16.msra.mxu1 %v5649_v0  ;;  %v5706_v63 = vld [vmem:[%s7522_s0 + $0x150] ss:$28 sps:$4 sm:$0xff]  }
  0x40   :  { %2284 = vmatprep.subr.bf16.mxu0 %v5655_v1  ;;  %3056 = vmatprep.subr.bf16.mxu1 %v5658_v2  ;;  %v5713_v0 = vld [vmem:[%s7522_s0 + $0x18c] ss:$28 sps:$4 sm:$0xff]   ;;  %v5761_v1 = vld [vmem:[%s7521_s1 + $0x380] ss:$16 sps:$4 sm:$0xff]  }
  0x41   :  { %v5764_v2 = vld [vmem:[%s7521_s1 + $0x388] ss:$16 sps:$4 sm:$0xff]  }
  0x42   :  { %2124 = vmatmul.mubr.bf16.vlgmr.msra.gmra.mrb[0].mxu0 %v5650_v3  ;;  %2896 = vmatmul.mubr.bf16.vlgmr.msra.gmra.mrb[0].mxu1 %v5650_v3  ;;  %v5772_v3 = vld [vmem:[%s7521_s1 + $0x3a4] ss:$16 sps:$4 sm:$0xff]  }
  0x43   :  { %2285 = vmatpush1.bf16.msra.mxu0 %v5653_v4  ;;  %3057 = vmatpush1.bf16.msra.mxu1 %v5656_v5  ;;  %v5775_v4 = vld [vmem:[%s7521_s1 + $0x3ac] ss:$16 sps:$4 sm:$0xff]   ;;  %v5770_v5 = vld [vmem:[%s7521_s1 + $0x3a0] ss:$16 sps:$4 sm:$0xff]  }
  0x44   :  { %2133 = vmatprep.mubr.bf16.mxu0 %v5659_v6  ;;  %2905 = vmatprep.mubr.bf16.mxu1 %v5659_v6  ;;  %v5773_v6 = vld [vmem:[%s7521_s1 + $0x3a8] ss:$16 sps:$4 sm:$0xff]  }
  0x45   :  { %2286 = vmatprep.subr.bf16.mxu0 %v5664_v7  ;;  %3058 = vmatprep.subr.bf16.mxu1 %v5667_v8  ;;  %v5781_v7 = vld [vmem:[%s7521_s1 + $0x3c4] ss:$16 sps:$4 sm:$0xff]   ;;  %v5784_v8 = vld [vmem:[%s7521_s1 + $0x3cc] ss:$16 sps:$4 sm:$0xff]  }
  0x47   :  { %2287 = vmatpush1.bf16.msra.mxu0 %v5662_v9  ;;  %3059 = vmatpush1.bf16.msra.mxu1 %v5665_v10  ;;  %v5715_v9 = vld [vmem:[%s7522_s0 + $0x188] ss:$28 sps:$4 sm:$0xff]  }
  0x48   :  { %2288 = vmatprep.subr.bf16.mxu0 %v5673_v11  ;;  %3060 = vmatprep.subr.bf16.mxu1 %v5676_v12  ;;  %v5722_v10 = vld [vmem:[%s7522_s0 + $0x1c4] ss:$28 sps:$4 sm:$0xff]   ;;  %v5782_v12 = vld [vmem:[%s7521_s1 + $0x3c8] ss:$16 sps:$4 sm:$0xff]  }
  0x49   :  { %v5779_v11 = vld [vmem:[%s7521_s1 + $0x3c0] ss:$16 sps:$4 sm:$0xff]  }
  0x4a   :  { %2134 = vmatmul.mubr.bf16.gmra.mrb[4].mxu0 %v5661_v13  ;;  %2906 = vmatmul.mubr.bf16.gmra.mrb[4].mxu1 %v5661_v13  ;;  %v5790_v13 = vld [vmem:[%s7521_s1 + $0x3e4] ss:$16 sps:$4 sm:$0xff]  }
  0x4b   :  { %2143 = vmatprep.mubr.bf16.mxu0 %v5668_v14  ;;  %2915 = vmatprep.mubr.bf16.mxu1 %v5668_v14  ;;  %v5793_v14 = vld [vmem:[%s7521_s1 + $0x3ec] ss:$16 sps:$4 sm:$0xff]  }
  0x4c   :  { %2289 = vmatpush1.bf16.msra.mxu0 %v5671_v15  ;;  %3061 = vmatpush1.bf16.msra.mxu1 %v5674_v16  ;;  %v5788_v15 = vld [vmem:[%s7521_s1 + $0x3e0] ss:$16 sps:$4 sm:$0xff]   ;;  %v5791_v16 = vld [vmem:[%s7521_s1 + $0x3e8] ss:$16 sps:$4 sm:$0xff]  }
  0x4d   :  { %2290 = vmatprep.subr.bf16.mxu0 %v5682_v17  ;;  %3062 = vmatprep.subr.bf16.mxu1 %v5685_v18  ;;  %v5799_v17 = vld [vmem:[%s7521_s1 + $0x404] ss:$16 sps:$4 sm:$0xff]   ;;  %v5802_v18 = vld [vmem:[%s7521_s1 + $0x40c] ss:$16 sps:$4 sm:$0xff]  }
  0x50   :  { %2291 = vmatpush1.bf16.msra.mxu0 %v5680_v19  ;;  %3063 = vmatpush1.bf16.msra.mxu1 %v5683_v20  ;;  %v5724_v19 = vld [vmem:[%s7522_s0 + $0x1c0] ss:$28 sps:$4 sm:$0xff]  }
  0x51   :  { %2292 = vmatprep.subr.bf16.mxu0 %v5691_v21  ;;  %3064 = vmatprep.subr.bf16.mxu1 %v5694_v22  ;;  %v5731_v20 = vld [vmem:[%s7522_s0 + $0x1fc] ss:$28 sps:$4 sm:$0xff]   ;;  %v5740_v22 = vld [vmem:[%s7522_s0 + $0x234] ss:$28 sps:$4 sm:$0xff]  }
  0x52   :  { %2144 = vmatmul.mubr.bf16.gmra.mrb[8].mxu0 %v5670_v23  ;;  %2916 = vmatmul.mubr.bf16.gmra.mrb[8].mxu1 %v5670_v23  ;;  %v5733_v21 = vld [vmem:[%s7522_s0 + $0x1f8] ss:$28 sps:$4 sm:$0xff]   ;;  %v5742_v23 = vld [vmem:[%s7522_s0 + $0x230] ss:$28 sps:$4 sm:$0xff]  }
  0x53   :  { %2153 = vmatprep.mubr.bf16.mxu0 %v5677_v24  ;;  %2925 = vmatprep.mubr.bf16.mxu1 %v5677_v24  ;;  %v5749_v24 = vld [vmem:[%s7522_s0 + $0x26c] ss:$28 sps:$4 sm:$0xff]  }
  0x54   :  { %2293 = vmatpush1.bf16.msra.mxu0 %v5689_v25  ;;  %3065 = vmatpush1.bf16.msra.mxu1 %v5692_v26  ;;  %v5751_v25 = vld [vmem:[%s7522_s0 + $0x268] ss:$28 sps:$4 sm:$0xff]  }
  0x55   :  { %2294 = vmatprep.subr.bf16.mxu0 %v5700_v27  ;;  %3066 = vmatprep.subr.bf16.mxu1 %v5703_v28  ;;  %v5758_v26 = vld [vmem:[%s7522_s0 + $0x2a4] ss:$28 sps:$4 sm:$0xff]   ;;  %v5767_v28 = vld [vmem:[%s7522_s0 + $0x2dc] ss:$28 sps:$4 sm:$0xff]  }
  0x56   :  { %v5760_v27 = vld [vmem:[%s7522_s0 + $0x2a0] ss:$28 sps:$4 sm:$0xff]  }
  0x58   :  { %2295 = vmatpush1.bf16.msra.mxu0 %v5698_v29  ;;  %3067 = vmatpush1.bf16.msra.mxu1 %v5701_v30  ;;  %v5769_v29 = vld [vmem:[%s7522_s0 + $0x2d8] ss:$28 sps:$4 sm:$0xff]  }
  0x59   :  { %2296 = vmatprep.subr.bf16.mxu0 %v5709_v31  ;;  %3068 = vmatprep.subr.bf16.mxu1 %v5712_v32  ;;  %v5776_v30 = vld [vmem:[%s7522_s0 + $0x314] ss:$28 sps:$4 sm:$0xff]   ;;  %v5785_v32 = vld [vmem:[%s7522_s0 + $0x34c] ss:$28 sps:$4 sm:$0xff]  }
  0x5a   :  { %2154 = vmatmul.mubr.bf16.gmra.mrb[12].mxu0 %v5679_v33  ;;  %2926 = vmatmul.mubr.bf16.gmra.mrb[12].mxu1 %v5679_v33  ;;  %v5778_v31 = vld [vmem:[%s7522_s0 + $0x310] ss:$28 sps:$4 sm:$0xff]   ;;  %v5787_v33 = vld [vmem:[%s7522_s0 + $0x348] ss:$28 sps:$4 sm:$0xff]  }
  0x5b   :  { %2163 = vmatprep.mubr.bf16.mxu0 %v5686_v34  ;;  %2935 = vmatprep.mubr.bf16.mxu1 %v5686_v34  ;;  %v5796_v34 = vld [vmem:[%s7522_s0 + $0xc] ss:$28 sps:$4 sm:$0xff]  }
  0x5c   :  { %2297 = vmatpush1.bf16.msra.mxu0 %v5707_v35  ;;  %3069 = vmatpush1.bf16.msra.mxu1 %v5710_v36  ;;  %v5794_v35 = vld [vmem:[%s7522_s0 + $0x8] ss:$28 sps:$4 sm:$0xff]   ;;  %v5797_v36 = vld [vmem:[%s7521_s1 + $0x400] ss:$16 sps:$4 sm:$0xff]  }
  0x5d   :  { %2298 = vmatprep.subr.bf16.mxu0 %v5718_v37  ;;  %3070 = vmatprep.subr.bf16.mxu1 %v5721_v38  ;;  %v5800_v37 = vld [vmem:[%s7521_s1 + $0x408] ss:$16 sps:$4 sm:$0xff]   ;;  %v5803_v38 = vld [vmem:[%s7522_s0 + $0x44] ss:$28 sps:$4 sm:$0xff]  }
  0x60   :  { %2299 = vmatpush1.bf16.msra.mxu0 %v5716_v39  ;;  %3071 = vmatpush1.bf16.msra.mxu1 %v5719_v40  ;;  %v5808_v39 = vld [vmem:[%s7521_s1 + $0x424] ss:$16 sps:$4 sm:$0xff]   ;;  %v5811_v40 = vld [vmem:[%s7521_s1 + $0x42c] ss:$16 sps:$4 sm:$0xff]  }
  0x61   :  { %2300 = vmatprep.subr.bf16.mxu0 %v5727_v41  ;;  %3072 = vmatprep.subr.bf16.mxu1 %v5730_v42  ;;  %v5806_v41 = vld [vmem:[%s7521_s1 + $0x420] ss:$16 sps:$4 sm:$0xff]   ;;  %v5809_v42 = vld [vmem:[%s7521_s1 + $0x428] ss:$16 sps:$4 sm:$0xff]  }
  0x62   :  { %2164 = vmatmul.mubr.bf16.gmra.mrb[16].mxu0 %v5688_v43  ;;  %2936 = vmatmul.mubr.bf16.gmra.mrb[16].mxu1 %v5688_v43  ;;  %v5817_v43 = vld [vmem:[%s7521_s1 + $0x444] ss:$16 sps:$4 sm:$0xff]  }
  0x63   :  { %2173 = vmatprep.mubr.bf16.mxu0 %v5695_v44  ;;  %2945 = vmatprep.mubr.bf16.mxu1 %v5695_v44  ;;  %v5805_v44 = vld [vmem:[%s7522_s0 + $0x40] ss:$28 sps:$4 sm:$0xff]  }
  0x64   :  { %2301 = vmatpush1.bf16.msra.mxu0 %v5725_v45  ;;  %3073 = vmatpush1.bf16.msra.mxu1 %v5728_v46  ;;  %v5820_v45 = vld [vmem:[%s7521_s1 + $0x44c] ss:$16 sps:$4 sm:$0xff]  }
  0x65   :  { %2302 = vmatprep.subr.bf16.mxu0 %v5736_v47  ;;  %3074 = vmatprep.subr.bf16.mxu1 %v5739_v48  ;;  %v5812_v46 = vld [vmem:[%s7522_s0 + $0x7c] ss:$28 sps:$4 sm:$0xff]   ;;  %v5815_v47 = vld [vmem:[%s7521_s1 + $0x440] ss:$16 sps:$4 sm:$0xff]  }
  0x66   :  { %v5818_v48 = vld [vmem:[%s7521_s1 + $0x448] ss:$16 sps:$4 sm:$0xff]  }
  0x68   :  { %2303 = vmatpush1.bf16.msra.mxu0 %v5734_v49  ;;  %3075 = vmatpush1.bf16.msra.mxu1 %v5737_v50  ;;  %v5826_v49 = vld [vmem:[%s7521_s1 + $0x464] ss:$16 sps:$4 sm:$0xff]   ;;  %v5829_v50 = vld [vmem:[%s7521_s1 + $0x46c] ss:$16 sps:$4 sm:$0xff]  }
  0x69   :  { %2304 = vmatprep.subr.bf16.mxu0 %v5745_v51  ;;  %3076 = vmatprep.subr.bf16.mxu1 %v5748_v52  ;;  %v5824_v51 = vld [vmem:[%s7521_s1 + $0x460] ss:$16 sps:$4 sm:$0xff]   ;;  %v5827_v52 = vld [vmem:[%s7521_s1 + $0x468] ss:$16 sps:$4 sm:$0xff]  }
  0x6a   :  { %2174 = vmatmul.mubr.bf16.gmra.mrb[20].mxu0 %v5697_v53  ;;  %2946 = vmatmul.mubr.bf16.gmra.mrb[20].mxu1 %v5697_v53  ;;  %v5835_v53 = vld [vmem:[%s7521_s1 + $0x484] ss:$16 sps:$4 sm:$0xff]  }
  0x6b   :  { %2183 = vmatprep.mubr.bf16.mxu0 %v5704_v54  ;;  %2955 = vmatprep.mubr.bf16.mxu1 %v5704_v54  ;;  %v5838_v54 = vld [vmem:[%s7521_s1 + $0x48c] ss:$16 sps:$4 sm:$0xff]  }
  0x6c   :  { %2305 = vmatpush1.bf16.msra.mxu0 %v5743_v55  ;;  %3077 = vmatpush1.bf16.msra.mxu1 %v5746_v56  ;;  %v5814_v55 = vld [vmem:[%s7522_s0 + $0x78] ss:$28 sps:$4 sm:$0xff]  }
  0x6d   :  { %2306 = vmatprep.subr.bf16.mxu0 %v5754_v57  ;;  %3078 = vmatprep.subr.bf16.mxu1 %v5757_v58  ;;  %v5821_v56 = vld [vmem:[%s7522_s0 + $0xb4] ss:$28 sps:$4 sm:$0xff]   ;;  %v5836_v58 = vld [vmem:[%s7521_s1 + $0x488] ss:$16 sps:$4 sm:$0xff]  }
  0x6e   :  { %v5833_v57 = vld [vmem:[%s7521_s1 + $0x480] ss:$16 sps:$4 sm:$0xff]  }
  0x70   :  { %2307 = vmatpush1.bf16.msra.mxu0 %v5752_v59  ;;  %3079 = vmatpush1.bf16.msra.mxu1 %v5755_v60  ;;  %v5844_v59 = vld [vmem:[%s7521_s1 + $0x4a4] ss:$16 sps:$4 sm:$0xff]   ;;  %v5847_v60 = vld [vmem:[%s7521_s1 + $0x4ac] ss:$16 sps:$4 sm:$0xff]  }
  0x71   :  { %2308 = vmatprep.subr.bf16.mxu0 %v5763_v61  ;;  %3080 = vmatprep.subr.bf16.mxu1 %v5766_v62  ;;  %v5842_v61 = vld [vmem:[%s7521_s1 + $0x4a0] ss:$16 sps:$4 sm:$0xff]   ;;  %v5845_v62 = vld [vmem:[%s7521_s1 + $0x4a8] ss:$16 sps:$4 sm:$0xff]  }
  0x72   :  { %2184 = vmatmul.mubr.bf16.gmra.mrb[24].mxu0 %v5706_v63  ;;  %2956 = vmatmul.mubr.bf16.gmra.mrb[24].mxu1 %v5706_v63  ;;  %v5853_v63 = vld [vmem:[%s7521_s1 + $0x4c4] ss:$16 sps:$4 sm:$0xff]  }
  0x73   :  { %2193 = vmatprep.mubr.bf16.mxu0 %v5713_v0  ;;  %2965 = vmatprep.mubr.bf16.mxu1 %v5713_v0  ;;  %v5856_v0 = vld [vmem:[%s7521_s1 + $0x4cc] ss:$16 sps:$4 sm:$0xff]  }
  0x74   :  { %2309 = vmatpush1.bf16.msra.mxu0 %v5761_v1  ;;  %3081 = vmatpush1.bf16.msra.mxu1 %v5764_v2  ;;  %v5823_v1 = vld [vmem:[%s7522_s0 + $0xb0] ss:$28 sps:$4 sm:$0xff]  }
  0x75   :  { %2310 = vmatprep.subr.bf16.mxu0 %v5772_v3  ;;  %3082 = vmatprep.subr.bf16.mxu1 %v5775_v4  ;;  %v5830_v2 = vld [vmem:[%s7522_s0 + $0xec] ss:$28 sps:$4 sm:$0xff]   ;;  %v5851_v3 = vld [vmem:[%s7521_s1 + $0x4c0] ss:$16 sps:$4 sm:$0xff]  }
  0x76   :  { %v5854_v4 = vld [vmem:[%s7521_s1 + $0x4c8] ss:$16 sps:$4 sm:$0xff]  }
  0x78   :  { %2311 = vmatpush1.bf16.msra.mxu0 %v5770_v5  ;;  %3083 = vmatpush1.bf16.msra.mxu1 %v5773_v6  ;;  %v5862_v5 = vld [vmem:[%s7521_s1 + $0x4e4] ss:$16 sps:$4 sm:$0xff]   ;;  %v5865_v6 = vld [vmem:[%s7521_s1 + $0x4ec] ss:$16 sps:$4 sm:$0xff]  }
  0x79   :  { %2312 = vmatprep.subr.bf16.mxu0 %v5781_v7  ;;  %3084 = vmatprep.subr.bf16.mxu1 %v5784_v8  ;;  %v5860_v7 = vld [vmem:[%s7521_s1 + $0x4e0] ss:$16 sps:$4 sm:$0xff]   ;;  %v5863_v8 = vld [vmem:[%s7521_s1 + $0x4e8] ss:$16 sps:$4 sm:$0xff]  }
  0x7a   :  { %2194 = vmatmul.mubr.bf16.gmra.mrb[28].mxu0 %v5715_v9  ;;  %2966 = vmatmul.mubr.bf16.gmra.mrb[28].mxu1 %v5715_v9  ;;  %v5871_v9 = vld [vmem:[%s7521_s1 + $0x504] ss:$16 sps:$4 sm:$0xff]  }
  0x7b   :  { %2203 = vmatprep.mubr.bf16.mxu0 %v5722_v10  ;;  %2975 = vmatprep.mubr.bf16.mxu1 %v5722_v10  ;;  %v5874_v10 = vld [vmem:[%s7521_s1 + $0x50c] ss:$16 sps:$4 sm:$0xff]  }
  0x7c   :  { %2313 = vmatpush1.bf16.msra.mxu0 %v5779_v11  ;;  %3085 = vmatpush1.bf16.msra.mxu1 %v5782_v12  ;;  %v5832_v11 = vld [vmem:[%s7522_s0 + $0xe8] ss:$28 sps:$4 sm:$0xff]  }
  0x7d   :  { %2314 = vmatprep.subr.bf16.mxu0 %v5790_v13  ;;  %3086 = vmatprep.subr.bf16.mxu1 %v5793_v14  ;;  %v5839_v12 = vld [vmem:[%s7522_s0 + $0x124] ss:$28 sps:$4 sm:$0xff]   ;;  %v5872_v14 = vld [vmem:[%s7521_s1 + $0x508] ss:$16 sps:$4 sm:$0xff]  }
  0x7e   :  { %v5869_v13 = vld [vmem:[%s7521_s1 + $0x500] ss:$16 sps:$4 sm:$0xff]  }
  0x80   :  { %2315 = vmatpush1.bf16.msra.mxu0 %v5788_v15  ;;  %3087 = vmatpush1.bf16.msra.mxu1 %v5791_v16  ;;  %v5880_v15 = vld [vmem:[%s7521_s1 + $0x524] ss:$16 sps:$4 sm:$0xff]   ;;  %v5883_v16 = vld [vmem:[%s7521_s1 + $0x52c] ss:$16 sps:$4 sm:$0xff]  }
  0x81   :  { %2477 = vmatprep.subr.bf16.mxu0 %v5799_v17  ;;  %3249 = vmatprep.subr.bf16.mxu1 %v5802_v18  ;;  %v5878_v17 = vld [vmem:[%s7521_s1 + $0x520] ss:$16 sps:$4 sm:$0xff]   ;;  %v5881_v18 = vld [vmem:[%s7521_s1 + $0x528] ss:$16 sps:$4 sm:$0xff]  }
  0x82   :  { %2204 = vmatmul.mubr.bf16.gmra.mrb[32].mxu0 %v5724_v19  ;;  %2976 = vmatmul.mubr.bf16.gmra.mrb[32].mxu1 %v5724_v19  ;;  %v5889_v19 = vld [vmem:[%s7521_s1 + $0x544] ss:$16 sps:$4 sm:$0xff]  }
  0x83   :  { %2213 = vmatprep.mubr.bf16.mxu0 %v5731_v20  ;;  %2985 = vmatprep.mubr.bf16.mxu1 %v5731_v20  ;;  %v5892_v20 = vld [vmem:[%s7521_s1 + $0x54c] ss:$16 sps:$4 sm:$0xff]  }
  0x8a   :  { %2214 = vmatmul.mubr.bf16.gmra.mrb[36].mxu0 %v5733_v21  ;;  %2986 = vmatmul.mubr.bf16.gmra.mrb[36].mxu1 %v5733_v21  ;;  %v5841_v21 = vld [vmem:[%s7522_s0 + $0x120] ss:$28 sps:$4 sm:$0xff]  }
  0x8b   :  { %2223 = vmatprep.mubr.bf16.mxu0 %v5740_v22  ;;  %2995 = vmatprep.mubr.bf16.mxu1 %v5740_v22  ;;  %v5848_v22 = vld [vmem:[%s7522_s0 + $0x15c] ss:$28 sps:$4 sm:$0xff]  }
  0x92   :  { %2224 = vmatmul.mubr.bf16.gmra.mrb[40].mxu0 %v5742_v23  ;;  %2996 = vmatmul.mubr.bf16.gmra.mrb[40].mxu1 %v5742_v23  ;;  %v5887_v23 = vld [vmem:[%s7521_s1 + $0x540] ss:$16 sps:$4 sm:$0xff]  }
  0x93   :  { %2233 = vmatprep.mubr.bf16.mxu0 %v5749_v24  ;;  %3005 = vmatprep.mubr.bf16.mxu1 %v5749_v24  ;;  %v5890_v24 = vld [vmem:[%s7521_s1 + $0x548] ss:$16 sps:$4 sm:$0xff]  }
  0x9a   :  { %2234 = vmatmul.mubr.bf16.gmra.mrb[44].mxu0 %v5751_v25  ;;  %3006 = vmatmul.mubr.bf16.gmra.mrb[44].mxu1 %v5751_v25  ;;  %v5898_v25 = vld [vmem:[%s7521_s1 + $0x564] ss:$16 sps:$4 sm:$0xff]  }
  0x9b   :  { %2243 = vmatprep.mubr.bf16.mxu0 %v5758_v26  ;;  %3015 = vmatprep.mubr.bf16.mxu1 %v5758_v26  ;;  %v5901_v26 = vld [vmem:[%s7521_s1 + $0x56c] ss:$16 sps:$4 sm:$0xff]  }
  0xa2   :  { %2244 = vmatmul.mubr.bf16.gmra.mrb[48].mxu0 %v5760_v27  ;;  %3016 = vmatmul.mubr.bf16.gmra.mrb[48].mxu1 %v5760_v27  ;;  %v5896_v27 = vld [vmem:[%s7521_s1 + $0x560] ss:$16 sps:$4 sm:$0xff]  }
  0xa3   :  { %2253 = vmatprep.mubr.bf16.mxu0 %v5767_v28  ;;  %3025 = vmatprep.mubr.bf16.mxu1 %v5767_v28  ;;  %v5899_v28 = vld [vmem:[%s7521_s1 + $0x568] ss:$16 sps:$4 sm:$0xff]  }
  0xaa   :  { %2254 = vmatmul.mubr.bf16.gmra.mrb[52].mxu0 %v5769_v29  ;;  %3026 = vmatmul.mubr.bf16.gmra.mrb[52].mxu1 %v5769_v29  ;;  %v5907_v29 = vld [vmem:[%s7521_s1 + $0x584] ss:$16 sps:$4 sm:$0xff]  }
  0xab   :  { %2263 = vmatprep.mubr.bf16.mxu0 %v5776_v30  ;;  %3035 = vmatprep.mubr.bf16.mxu1 %v5776_v30  ;;  %v5910_v30 = vld [vmem:[%s7521_s1 + $0x58c] ss:$16 sps:$4 sm:$0xff]  }
  0xb2   :  { %2264 = vmatmul.mubr.bf16.gmra.mrb[56].mxu0 %v5778_v31  ;;  %3036 = vmatmul.mubr.bf16.gmra.mrb[56].mxu1 %v5778_v31  ;;  %v5850_v31 = vld [vmem:[%s7522_s0 + $0x158] ss:$28 sps:$4 sm:$0xff]  }
  0xb3   :  { %2273 = vmatprep.mubr.bf16.mxu0 %v5785_v32  ;;  %3045 = vmatprep.mubr.bf16.mxu1 %v5785_v32  ;;  %v5857_v32 = vld [vmem:[%s7522_s0 + $0x194] ss:$28 sps:$4 sm:$0xff]  }
  0xba   :  { %2274 = vmatmul.mubr.bf16.gmra.mrb[60].mxu0 %v5787_v33  ;;  %3046 = vmatmul.mubr.bf16.gmra.mrb[60].mxu1 %v5787_v33  ;;  %v5905_v33 = vld [vmem:[%s7521_s1 + $0x580] ss:$16 sps:$4 sm:$0xff]  }
  0xbb   :  { %2316 = vmatprep.mubr.bf16.mxu0 %v5796_v34  ;;  %3088 = vmatprep.mubr.bf16.mxu1 %v5796_v34  ;;  %v5908_v34 = vld [vmem:[%s7521_s1 + $0x588] ss:$16 sps:$4 sm:$0xff]  }
  0xc2   :  { %2317 = vmatmul.mubr.bf16.vlgmr.msra.gmra.mrb[0].mxu0 %v5794_v35  ;;  %3089 = vmatmul.mubr.bf16.vlgmr.msra.gmra.mrb[0].mxu1 %v5794_v35  ;;  %v5916_v35 = vld [vmem:[%s7521_s1 + $0x5a4] ss:$16 sps:$4 sm:$0xff]  }
  0xc3   :  { %2478 = vmatpush1.bf16.msra.mxu0 %v5797_v36  ;;  %3250 = vmatpush1.bf16.msra.mxu1 %v5800_v37  ;;  %v5919_v36 = vld [vmem:[%s7521_s1 + $0x5ac] ss:$16 sps:$4 sm:$0xff]   ;;  %v5914_v37 = vld [vmem:[%s7521_s1 + $0x5a0] ss:$16 sps:$4 sm:$0xff]  }
  0xc4   :  { %2326 = vmatprep.mubr.bf16.mxu0 %v5803_v38  ;;  %3098 = vmatprep.mubr.bf16.mxu1 %v5803_v38  ;;  %v5917_v38 = vld [vmem:[%s7521_s1 + $0x5a8] ss:$16 sps:$4 sm:$0xff]  }
  0xc5   :  { %2479 = vmatprep.subr.bf16.mxu0 %v5808_v39  ;;  %3251 = vmatprep.subr.bf16.mxu1 %v5811_v40  ;;  %v5925_v39 = vld [vmem:[%s7521_s1 + $0x5c4] ss:$16 sps:$4 sm:$0xff]   ;;  %v5928_v40 = vld [vmem:[%s7521_s1 + $0x5cc] ss:$16 sps:$4 sm:$0xff]  }
  0xc7   :  { %2480 = vmatpush1.bf16.msra.mxu0 %v5806_v41  ;;  %3252 = vmatpush1.bf16.msra.mxu1 %v5809_v42  ;;  %v5859_v41 = vld [vmem:[%s7522_s0 + $0x190] ss:$28 sps:$4 sm:$0xff]  }
  0xc8   :  { %2481 = vmatprep.subr.bf16.mxu0 %v5817_v43  ;;  %3253 = vmatprep.subr.bf16.mxu1 %v5820_v45  ;;  %v5866_v42 = vld [vmem:[%s7522_s0 + $0x1cc] ss:$28 sps:$4 sm:$0xff]   ;;  %v5923_v43 = vld [vmem:[%s7521_s1 + $0x5c0] ss:$16 sps:$4 sm:$0xff]   ;;  %v5934_v45 = vld [vmem:[%s7521_s1 + $0x5e4] ss:$16 sps:$4 sm:$0xff]  }
  0xca   :  { %2327 = vmatmul.mubr.bf16.gmra.mrb[4].mxu0 %v5805_v44  ;;  %3099 = vmatmul.mubr.bf16.gmra.mrb[4].mxu1 %v5805_v44  ;;  %v5926_v44 = vld [vmem:[%s7521_s1 + $0x5c8] ss:$16 sps:$4 sm:$0xff]  }
  0xcb   :  { %2336 = vmatprep.mubr.bf16.mxu0 %v5812_v46  ;;  %3108 = vmatprep.mubr.bf16.mxu1 %v5812_v46  ;;  %v5937_v46 = vld [vmem:[%s7521_s1 + $0x5ec] ss:$16 sps:$4 sm:$0xff]  }
  0xcc   :  { %2482 = vmatpush1.bf16.msra.mxu0 %v5815_v47  ;;  %3254 = vmatpush1.bf16.msra.mxu1 %v5818_v48  ;;  %v5932_v47 = vld [vmem:[%s7521_s1 + $0x5e0] ss:$16 sps:$4 sm:$0xff]   ;;  %v5935_v48 = vld [vmem:[%s7521_s1 + $0x5e8] ss:$16 sps:$4 sm:$0xff]  }
  0xcd   :  { %2483 = vmatprep.subr.bf16.mxu0 %v5826_v49  ;;  %3255 = vmatprep.subr.bf16.mxu1 %v5829_v50  ;;  %v5943_v49 = vld [vmem:[%s7521_s1 + $0x604] ss:$16 sps:$4 sm:$0xff]   ;;  %v5946_v50 = vld [vmem:[%s7521_s1 + $0x60c] ss:$16 sps:$4 sm:$0xff]  }
  0xd0   :  { %2484 = vmatpush1.bf16.msra.mxu0 %v5824_v51  ;;  %3256 = vmatpush1.bf16.msra.mxu1 %v5827_v52  ;;  %v5868_v51 = vld [vmem:[%s7522_s0 + $0x1c8] ss:$28 sps:$4 sm:$0xff]  }
  0xd1   :  { %2485 = vmatprep.subr.bf16.mxu0 %v5835_v53  ;;  %3257 = vmatprep.subr.bf16.mxu1 %v5838_v54  ;;  %v5875_v52 = vld [vmem:[%s7522_s0 + $0x204] ss:$28 sps:$4 sm:$0xff]   ;;  %v5884_v54 = vld [vmem:[%s7522_s0 + $0x23c] ss:$28 sps:$4 sm:$0xff]  }
  0xd2   :  { %2337 = vmatmul.mubr.bf16.gmra.mrb[8].mxu0 %v5814_v55  ;;  %3109 = vmatmul.mubr.bf16.gmra.mrb[8].mxu1 %v5814_v55  ;;  %v5877_v53 = vld [vmem:[%s7522_s0 + $0x200] ss:$28 sps:$4 sm:$0xff]   ;;  %v5886_v55 = vld [vmem:[%s7522_s0 + $0x238] ss:$28 sps:$4 sm:$0xff]  }
  0xd3   :  { %2346 = vmatprep.mubr.bf16.mxu0 %v5821_v56  ;;  %3118 = vmatprep.mubr.bf16.mxu1 %v5821_v56  ;;  %v5893_v56 = vld [vmem:[%s7522_s0 + $0x274] ss:$28 sps:$4 sm:$0xff]  }
  0xd4   :  { %2486 = vmatpush1.bf16.msra.mxu0 %v5833_v57  ;;  %3258 = vmatpush1.bf16.msra.mxu1 %v5836_v58  ;;  %v5895_v57 = vld [vmem:[%s7522_s0 + $0x270] ss:$28 sps:$4 sm:$0xff]  }
  0xd5   :  { %2487 = vmatprep.subr.bf16.mxu0 %v5844_v59  ;;  %3259 = vmatprep.subr.bf16.mxu1 %v5847_v60  ;;  %v5902_v58 = vld [vmem:[%s7522_s0 + $0x2ac] ss:$28 sps:$4 sm:$0xff]   ;;  %v5911_v60 = vld [vmem:[%s7522_s0 + $0x2e4] ss:$28 sps:$4 sm:$0xff]  }
  0xd6   :  { %v5904_v59 = vld [vmem:[%s7522_s0 + $0x2a8] ss:$28 sps:$4 sm:$0xff]  }
  0xd8   :  { %2488 = vmatpush1.bf16.msra.mxu0 %v5842_v61  ;;  %3260 = vmatpush1.bf16.msra.mxu1 %v5845_v62  ;;  %v5913_v61 = vld [vmem:[%s7522_s0 + $0x2e0] ss:$28 sps:$4 sm:$0xff]  }
  0xd9   :  { %2489 = vmatprep.subr.bf16.mxu0 %v5853_v63  ;;  %3261 = vmatprep.subr.bf16.mxu1 %v5856_v0  ;;  %v5920_v62 = vld [vmem:[%s7522_s0 + $0x31c] ss:$28 sps:$4 sm:$0xff]   ;;  %v5929_v0 = vld [vmem:[%s7522_s0 + $0x354] ss:$28 sps:$4 sm:$0xff]  }
  0xda   :  { %2347 = vmatmul.mubr.bf16.gmra.mrb[12].mxu0 %v5823_v1  ;;  %3119 = vmatmul.mubr.bf16.gmra.mrb[12].mxu1 %v5823_v1  ;;  %v5922_v63 = vld [vmem:[%s7522_s0 + $0x318] ss:$28 sps:$4 sm:$0xff]   ;;  %v5931_v1 = vld [vmem:[%s7522_s0 + $0x350] ss:$28 sps:$4 sm:$0xff]  }
  0xdb   :  { %2356 = vmatprep.mubr.bf16.mxu0 %v5830_v2  ;;  %3128 = vmatprep.mubr.bf16.mxu1 %v5830_v2  ;;  %v5940_v2 = vld [vmem:[%s7522_s0 + $0x14] ss:$28 sps:$4 sm:$0xff]  }
  0xdc   :  { %2490 = vmatpush1.bf16.msra.mxu0 %v5851_v3  ;;  %3262 = vmatpush1.bf16.msra.mxu1 %v5854_v4  ;;  %v5938_v3 = vld [vmem:[%s7522_s0 + $0x10] ss:$28 sps:$4 sm:$0xff]  }
  0xdd   :  { %2491 = vmatprep.subr.bf16.mxu0 %v5862_v5  ;;  %3263 = vmatprep.subr.bf16.mxu1 %v5865_v6  ;;  %v5941_v4 = vld [vmem:[%s7521_s1 + $0x600] ss:$16 sps:$4 sm:$0xff]   ;;  %v5944_v5 = vld [vmem:[%s7521_s1 + $0x608] ss:$16 sps:$4 sm:$0xff]  }
  0xde   :  { %v5947_v6 = vld [vmem:[%s7522_s0 + $0x4c] ss:$28 sps:$4 sm:$0xff]  }
  0xe0   :  { %2492 = vmatpush1.bf16.msra.mxu0 %v5860_v7  ;;  %3264 = vmatpush1.bf16.msra.mxu1 %v5863_v8  ;;  %v5955_v7 = vld [vmem:[%s7521_s1 + $0x624] ss:$16 sps:$4 sm:$0xff]   ;;  %v5958_v8 = vld [vmem:[%s7521_s1 + $0x62c] ss:$16 sps:$4 sm:$0xff]  }
  0xe1   :  { %2493 = vmatprep.subr.bf16.mxu0 %v5871_v9  ;;  %3265 = vmatprep.subr.bf16.mxu1 %v5874_v10  ;;  %v5953_v9 = vld [vmem:[%s7521_s1 + $0x620] ss:$16 sps:$4 sm:$0xff]   ;;  %v5956_v10 = vld [vmem:[%s7521_s1 + $0x628] ss:$16 sps:$4 sm:$0xff]  }
  0xe2   :  { %2357 = vmatmul.mubr.bf16.gmra.mrb[16].mxu0 %v5832_v11  ;;  %3129 = vmatmul.mubr.bf16.gmra.mrb[16].mxu1 %v5832_v11  ;;  %v5967_v11 = vld [vmem:[%s7521_s1 + $0x644] ss:$16 sps:$4 sm:$0xff]  }
  0xe3   :  { %2366 = vmatprep.mubr.bf16.mxu0 %v5839_v12  ;;  %3138 = vmatprep.mubr.bf16.mxu1 %v5839_v12  ;;  %v5970_v12 = vld [vmem:[%s7521_s1 + $0x64c] ss:$16 sps:$4 sm:$0xff]  }
  0xe4   :  { %2494 = vmatpush1.bf16.msra.mxu0 %v5869_v13  ;;  %3266 = vmatpush1.bf16.msra.mxu1 %v5872_v14  ;;  %v5949_v13 = vld [vmem:[%s7522_s0 + $0x48] ss:$28 sps:$4 sm:$0xff]  }
  0xe5   :  { %2495 = vmatprep.subr.bf16.mxu0 %v5880_v15  ;;  %3267 = vmatprep.subr.bf16.mxu1 %v5883_v16  ;;  %v5950_v14 = vld [vmem:[%s7522_s0 + $0x84] ss:$28 sps:$4 sm:$0xff]   ;;  %v5968_v16 = vld [vmem:[%s7521_s1 + $0x648] ss:$16 sps:$4 sm:$0xff]  }
  0xe6   :  { %v5965_v15 = vld [vmem:[%s7521_s1 + $0x640] ss:$16 sps:$4 sm:$0xff]  }
  0xe8   :  { %2496 = vmatpush1.bf16.msra.mxu0 %v5878_v17  ;;  %3268 = vmatpush1.bf16.msra.mxu1 %v5881_v18  ;;  %v5979_v17 = vld [vmem:[%s7521_s1 + $0x664] ss:$16 sps:$4 sm:$0xff]   ;;  %v5982_v18 = vld [vmem:[%s7521_s1 + $0x66c] ss:$16 sps:$4 sm:$0xff]  }
  0xe9   :  { %2497 = vmatprep.subr.bf16.mxu0 %v5889_v19  ;;  %3269 = vmatprep.subr.bf16.mxu1 %v5892_v20  ;;  %v5977_v19 = vld [vmem:[%s7521_s1 + $0x660] ss:$16 sps:$4 sm:$0xff]   ;;  %v5980_v20 = vld [vmem:[%s7521_s1 + $0x668] ss:$16 sps:$4 sm:$0xff]  }
  0xea   :  { %2367 = vmatmul.mubr.bf16.gmra.mrb[20].mxu0 %v5841_v21  ;;  %3139 = vmatmul.mubr.bf16.gmra.mrb[20].mxu1 %v5841_v21  ;;  %v5991_v21 = vld [vmem:[%s7521_s1 + $0x684] ss:$16 sps:$4 sm:$0xff]  }
  0xeb   :  { %2376 = vmatprep.mubr.bf16.mxu0 %v5848_v22  ;;  %3148 = vmatprep.mubr.bf16.mxu1 %v5848_v22  ;;  %v5994_v22 = vld [vmem:[%s7521_s1 + $0x68c] ss:$16 sps:$4 sm:$0xff]  }
  0xec   :  { %2498 = vmatpush1.bf16.msra.mxu0 %v5887_v23  ;;  %3270 = vmatpush1.bf16.msra.mxu1 %v5890_v24  ;;  %v5952_v23 = vld [vmem:[%s7522_s0 + $0x80] ss:$28 sps:$4 sm:$0xff]  }
  0xed   :  { %2499 = vmatprep.subr.bf16.mxu0 %v5898_v25  ;;  %3271 = vmatprep.subr.bf16.mxu1 %v5901_v26  ;;  %v5959_v24 = vld [vmem:[%s7522_s0 + $0xbc] ss:$28 sps:$4 sm:$0xff]   ;;  %v5989_v25 = vld [vmem:[%s7521_s1 + $0x680] ss:$16 sps:$4 sm:$0xff]  }
  0xee   :  { %v5992_v26 = vld [vmem:[%s7521_s1 + $0x688] ss:$16 sps:$4 sm:$0xff]  }
  0xf0   :  { %2500 = vmatpush1.bf16.msra.mxu0 %v5896_v27  ;;  %3272 = vmatpush1.bf16.msra.mxu1 %v5899_v28  ;;  %v6003_v27 = vld [vmem:[%s7521_s1 + $0x6a4] ss:$16 sps:$4 sm:$0xff]   ;;  %v6006_v28 = vld [vmem:[%s7521_s1 + $0x6ac] ss:$16 sps:$4 sm:$0xff]  }
  0xf1   :  { %2501 = vmatprep.subr.bf16.mxu0 %v5907_v29  ;;  %3273 = vmatprep.subr.bf16.mxu1 %v5910_v30  ;;  %v6001_v29 = vld [vmem:[%s7521_s1 + $0x6a0] ss:$16 sps:$4 sm:$0xff]   ;;  %v6004_v30 = vld [vmem:[%s7521_s1 + $0x6a8] ss:$16 sps:$4 sm:$0xff]  }
  0xf2   :  { %2377 = vmatmul.mubr.bf16.gmra.mrb[24].mxu0 %v5850_v31  ;;  %3149 = vmatmul.mubr.bf16.gmra.mrb[24].mxu1 %v5850_v31  ;;  %v6015_v31 = vld [vmem:[%s7521_s1 + $0x6c4] ss:$16 sps:$4 sm:$0xff]  }
  0xf3   :  { %2386 = vmatprep.mubr.bf16.mxu0 %v5857_v32  ;;  %3158 = vmatprep.mubr.bf16.mxu1 %v5857_v32  ;;  %v6018_v32 = vld [vmem:[%s7521_s1 + $0x6cc] ss:$16 sps:$4 sm:$0xff]  }
  0xf4   :  { %2502 = vmatpush1.bf16.msra.mxu0 %v5905_v33  ;;  %3274 = vmatpush1.bf16.msra.mxu1 %v5908_v34  ;;  %v5961_v33 = vld [vmem:[%s7522_s0 + $0xb8] ss:$28 sps:$4 sm:$0xff]  }
  0xf5   :  { %2503 = vmatprep.subr.bf16.mxu0 %v5916_v35  ;;  %3275 = vmatprep.subr.bf16.mxu1 %v5919_v36  ;;  %v5962_v34 = vld [vmem:[%s7522_s0 + $0xf4] ss:$28 sps:$4 sm:$0xff]   ;;  %v6016_v36 = vld [vmem:[%s7521_s1 + $0x6c8] ss:$16 sps:$4 sm:$0xff]  }
  0xf6   :  { %v6013_v35 = vld [vmem:[%s7521_s1 + $0x6c0] ss:$16 sps:$4 sm:$0xff]  }
  0xf8   :  { %2504 = vmatpush1.bf16.msra.mxu0 %v5914_v37  ;;  %3276 = vmatpush1.bf16.msra.mxu1 %v5917_v38  ;;  %v6027_v37 = vld [vmem:[%s7521_s1 + $0x6e4] ss:$16 sps:$4 sm:$0xff]   ;;  %v6030_v38 = vld [vmem:[%s7521_s1 + $0x6ec] ss:$16 sps:$4 sm:$0xff]  }
  0xf9   :  { %2505 = vmatprep.subr.bf16.mxu0 %v5925_v39  ;;  %3277 = vmatprep.subr.bf16.mxu1 %v5928_v40  ;;  %v6025_v39 = vld [vmem:[%s7521_s1 + $0x6e0] ss:$16 sps:$4 sm:$0xff]   ;;  %v6028_v40 = vld [vmem:[%s7521_s1 + $0x6e8] ss:$16 sps:$4 sm:$0xff]  }
  0xfa   :  { %2387 = vmatmul.mubr.bf16.gmra.mrb[28].mxu0 %v5859_v41  ;;  %3159 = vmatmul.mubr.bf16.gmra.mrb[28].mxu1 %v5859_v41  ;;  %v5964_v41 = vld [vmem:[%s7522_s0 + $0xf0] ss:$28 sps:$4 sm:$0xff]  }
  0xfb   :  { %2396 = vmatprep.mubr.bf16.mxu0 %v5866_v42  ;;  %3168 = vmatprep.mubr.bf16.mxu1 %v5866_v42  ;;  %v5971_v42 = vld [vmem:[%s7522_s0 + $0x12c] ss:$28 sps:$4 sm:$0xff]  }
  0xfc   :  { %2506 = vmatpush1.bf16.msra.mxu0 %v5923_v43  ;;  %3278 = vmatpush1.bf16.msra.mxu1 %v5926_v44  ;;  %v5973_v43 = vld [vmem:[%s7522_s0 + $0x128] ss:$28 sps:$4 sm:$0xff]  }
  0xfd   :  { %2507 = vmatprep.subr.bf16.mxu0 %v5934_v45  ;;  %3279 = vmatprep.subr.bf16.mxu1 %v5937_v46  ;;  %v5974_v44 = vld [vmem:[%s7522_s0 + $0x164] ss:$28 sps:$4 sm:$0xff]   ;;  %v5983_v46 = vld [vmem:[%s7522_s0 + $0x19c] ss:$28 sps:$4 sm:$0xff]  }
  0xfe   :  { %v5976_v45 = vld [vmem:[%s7522_s0 + $0x160] ss:$28 sps:$4 sm:$0xff]  }
 0x100   :  { %2508 = vmatpush1.bf16.msra.mxu0 %v5932_v47  ;;  %3280 = vmatpush1.bf16.msra.mxu1 %v5935_v48  ;;  %v5985_v47 = vld [vmem:[%s7522_s0 + $0x198] ss:$28 sps:$4 sm:$0xff]  }
 0x101   :  { %2670 = vmatprep.subr.bf16.mxu0 %v5943_v49  ;;  %3442 = vmatprep.subr.bf16.mxu1 %v5946_v50  ;;  %v5986_v48 = vld [vmem:[%s7522_s0 + $0x1d4] ss:$28 sps:$4 sm:$0xff]   ;;  %v5995_v50 = vld [vmem:[%s7522_s0 + $0x20c] ss:$28 sps:$4 sm:$0xff]  }
 0x102   :  { %2397 = vmatmul.mubr.bf16.gmra.mrb[32].mxu0 %v5868_v51  ;;  %3169 = vmatmul.mubr.bf16.gmra.mrb[32].mxu1 %v5868_v51  ;;  %v5988_v49 = vld [vmem:[%s7522_s0 + $0x1d0] ss:$28 sps:$4 sm:$0xff]   ;;  %v5997_v51 = vld [vmem:[%s7522_s0 + $0x208] ss:$28 sps:$4 sm:$0xff]  }
 0x103   :  { %2406 = vmatprep.mubr.bf16.mxu0 %v5875_v52  ;;  %3178 = vmatprep.mubr.bf16.mxu1 %v5875_v52  ;;  %v5998_v52 = vld [vmem:[%s7522_s0 + $0x244] ss:$28 sps:$4 sm:$0xff]  }
 0x10a   :  { %2407 = vmatmul.mubr.bf16.gmra.mrb[36].mxu0 %v5877_v53  ;;  %3179 = vmatmul.mubr.bf16.gmra.mrb[36].mxu1 %v5877_v53  ;;  %v6000_v53 = vld [vmem:[%s7522_s0 + $0x240] ss:$28 sps:$4 sm:$0xff]  }
 0x10b   :  { %2416 = vmatprep.mubr.bf16.mxu0 %v5884_v54  ;;  %3188 = vmatprep.mubr.bf16.mxu1 %v5884_v54  ;;  %v6007_v54 = vld [vmem:[%s7522_s0 + $0x27c] ss:$28 sps:$4 sm:$0xff]  }
 0x112   :  { %2417 = vmatmul.mubr.bf16.gmra.mrb[40].mxu0 %v5886_v55  ;;  %3189 = vmatmul.mubr.bf16.gmra.mrb[40].mxu1 %v5886_v55  ;;  %v6009_v55 = vld [vmem:[%s7522_s0 + $0x278] ss:$28 sps:$4 sm:$0xff]  }
 0x113   :  { %2426 = vmatprep.mubr.bf16.mxu0 %v5893_v56  ;;  %3198 = vmatprep.mubr.bf16.mxu1 %v5893_v56  ;;  %v6010_v56 = vld [vmem:[%s7522_s0 + $0x2b4] ss:$28 sps:$4 sm:$0xff]  }
 0x11a   :  { %2427 = vmatmul.mubr.bf16.gmra.mrb[44].mxu0 %v5895_v57  ;;  %3199 = vmatmul.mubr.bf16.gmra.mrb[44].mxu1 %v5895_v57  ;;  %v6046_v57 = vld [vmem:[%s7523_s3 + $0x40] sm:$0xff]  }
 0x11b   :  { %2436 = vmatprep.mubr.bf16.mxu0 %v5902_v58  ;;  %3208 = vmatprep.mubr.bf16.mxu1 %v5902_v58  ;;  %v6012_v58 = vld [vmem:[%s7522_s0 + $0x2b0] ss:$28 sps:$4 sm:$0xff]  }
 0x122   :  { %2437 = vmatmul.mubr.bf16.gmra.mrb[48].mxu0 %v5904_v59  ;;  %3209 = vmatmul.mubr.bf16.gmra.mrb[48].mxu1 %v5904_v59  ;;  %v6019_v59 = vld [vmem:[%s7522_s0 + $0x2ec] ss:$28 sps:$4 sm:$0xff]  }
 0x123   :  { %2446 = vmatprep.mubr.bf16.mxu0 %v5911_v60  ;;  %3218 = vmatprep.mubr.bf16.mxu1 %v5911_v60  ;;  %v6049_v60 = vld [vmem:[%s7523_s3 + $0xc0] sm:$0xff]  }
 0x12a   :  { %2447 = vmatmul.mubr.bf16.gmra.mrb[52].mxu0 %v5913_v61  ;;  %3219 = vmatmul.mubr.bf16.gmra.mrb[52].mxu1 %v5913_v61  ;;  %v6021_v61 = vld [vmem:[%s7522_s0 + $0x2e8] ss:$28 sps:$4 sm:$0xff]  }
 0x12b   :  { %2456 = vmatprep.mubr.bf16.mxu0 %v5920_v62  ;;  %3228 = vmatprep.mubr.bf16.mxu1 %v5920_v62  ;;  %v6022_v62 = vld [vmem:[%s7522_s0 + $0x324] ss:$28 sps:$4 sm:$0xff]  }
 0x132   :  { %2457 = vmatmul.mubr.bf16.gmra.mrb[56].mxu0 %v5922_v63  ;;  %3229 = vmatmul.mubr.bf16.gmra.mrb[56].mxu1 %v5922_v63  ;;  %v6024_v63 = vld [vmem:[%s7522_s0 + $0x320] ss:$28 sps:$4 sm:$0xff]  }
 0x133   :  { %2466 = vmatprep.mubr.bf16.mxu0 %v5929_v0  ;;  %3238 = vmatprep.mubr.bf16.mxu1 %v5929_v0  ;;  %v6031_v0 = vld [vmem:[%s7522_s0 + $0x35c] ss:$28 sps:$4 sm:$0xff]  }
 0x13a   :  { %2467 = vmatmul.mubr.bf16.gmra.mrb[60].mxu0 %v5931_v1  ;;  %3239 = vmatmul.mubr.bf16.gmra.mrb[60].mxu1 %v5931_v1  ;;  %v6033_v1 = vld [vmem:[%s7522_s0 + $0x358] ss:$28 sps:$4 sm:$0xff]  }
 0x13b   :  { %2509 = vmatprep.mubr.bf16.mxu0 %v5940_v2  ;;  %3281 = vmatprep.mubr.bf16.mxu1 %v5940_v2  ;;  %v6082_v2 = vmov 0  }
 0x142   :  { %2510 = vmatmul.mubr.bf16.vlgmr.msra.gmra.mrb[0].mxu0 %v5938_v3  ;;  %3282 = vmatmul.mubr.bf16.vlgmr.msra.gmra.mrb[0].mxu1 %v5938_v3  ;;  %v6034_v3 = vld [vmem:[%s7522_s0 + $0x18] ss:$28 sps:$4 sm:$0xff]  }
 0x143   :  { %2671 = vmatpush1.bf16.msra.mxu0 %v5941_v4  ;;  %3443 = vmatpush1.bf16.msra.mxu1 %v5944_v5  ;;  %v6047_v4 = vld [vmem:[%s7523_s3] sm:$0xff]  }
 0x144   :  { %2519 = vmatprep.mubr.bf16.mxu0 %v5947_v6  ;;  %3291 = vmatprep.mubr.bf16.mxu1 %v5947_v6  ;;  %v6050_v5 = vld [vmem:[%s7523_s3 + $0x80] sm:$0xff]   ;;  %v6052_v6 = vld [vmem:[%s7523_s3 + $0x48] sm:$0xff]  }
 0x145   :  { %2672 = vmatprep.subr.bf16.mxu0 %v5955_v7  ;;  %3444 = vmatprep.subr.bf16.mxu1 %v5958_v8  ;;  %v6055_v7 = vld [vmem:[%s7523_s3 + $0xc8] sm:$0xff]  }
 0x146   :  { %v6053_v8 = vld [vmem:[%s7523_s3 + $0x8] sm:$0xff]  }
 0x147   :  { %2673 = vmatpush1.bf16.msra.mxu0 %v5953_v9  ;;  %3445 = vmatpush1.bf16.msra.mxu1 %v5956_v10  ;;  %v6056_v9 = vld [vmem:[%s7523_s3 + $0x88] sm:$0xff]   ;;  %v6058_v10 = vld [vmem:[%s7523_s3 + $0x50] sm:$0xff]  }
 0x148   :  { %2674 = vmatprep.subr.bf16.mxu0 %v5967_v11  ;;  %3446 = vmatprep.subr.bf16.mxu1 %v5970_v12  ;;  %v6060_v11 = vld [vmem:[%s7523_s3 + $0xd0] sm:$0xff]  }
 0x149   :  { %v6035_v12 = vld [vmem:[%s7522_s0 + $0x50] ss:$28 sps:$4 sm:$0xff]  }
 0x14a   :  { %2520 = vmatmul.mubr.bf16.gmra.mrb[4].mxu0 %v5949_v13  ;;  %3292 = vmatmul.mubr.bf16.gmra.mrb[4].mxu1 %v5949_v13  ;;  %v6059_v13 = vld [vmem:[%s7523_s3 + $0x10] sm:$0xff]  }
 0x14b   :  { %2529 = vmatprep.mubr.bf16.mxu0 %v5950_v14  ;;  %3301 = vmatprep.mubr.bf16.mxu1 %v5950_v14  ;;  %v6061_v14 = vld [vmem:[%s7523_s3 + $0x90] sm:$0xff]  }
 0x14c   :  { %2675 = vmatpush1.bf16.msra.mxu0 %v5965_v15  ;;  %3447 = vmatpush1.bf16.msra.mxu1 %v5968_v16  ;;  %v6062_v15 = vld [vmem:[%s7523_s3 + $0x58] sm:$0xff]  }
 0x14d   :  { %2676 = vmatprep.subr.bf16.mxu0 %v5979_v17  ;;  %3448 = vmatprep.subr.bf16.mxu1 %v5982_v18  ;;  %v6064_v16 = vld [vmem:[%s7523_s3 + $0xd8] sm:$0xff]  }
 0x14e   :  { %v6063_v17 = vld [vmem:[%s7523_s3 + $0x18] sm:$0xff]  }
 0x14f   :  { %v6065_v18 = vld [vmem:[%s7523_s3 + $0x98] sm:$0xff]  }
 0x150   :  { %2677 = vmatpush1.bf16.msra.mxu0 %v5977_v19  ;;  %3449 = vmatpush1.bf16.msra.mxu1 %v5980_v20  ;;  %v6066_v19 = vld [vmem:[%s7523_s3 + $0x60] sm:$0xff]  }
 0x151   :  { %2678 = vmatprep.subr.bf16.mxu0 %v5991_v21  ;;  %3450 = vmatprep.subr.bf16.mxu1 %v5994_v22  ;;  %v6068_v20 = vld [vmem:[%s7523_s3 + $0xe0] sm:$0xff]  }
 0x152   :  { %2530 = vmatmul.mubr.bf16.gmra.mrb[8].mxu0 %v5952_v23  ;;  %3302 = vmatmul.mubr.bf16.gmra.mrb[8].mxu1 %v5952_v23  ;;  %v6036_v21 = vld [vmem:[%s7522_s0 + $0x88] ss:$28 sps:$4 sm:$0xff]  }
 0x153   :  { %2539 = vmatprep.mubr.bf16.mxu0 %v5959_v24  ;;  %3311 = vmatprep.mubr.bf16.mxu1 %v5959_v24  ;;  %v6067_v22 = vld [vmem:[%s7523_s3 + $0x20] sm:$0xff]   ;;  %v6070_v24 = vld [vmem:[%s7523_s3 + $0x68] sm:$0xff]  }
 0x154   :  { %2679 = vmatpush1.bf16.msra.mxu0 %v5989_v25  ;;  %3451 = vmatpush1.bf16.msra.mxu1 %v5992_v26  ;;  %v6069_v23 = vld [vmem:[%s7523_s3 + $0xa0] sm:$0xff]   ;;  %v6072_v25 = vld [vmem:[%s7523_s3 + $0xe8] sm:$0xff]  }
 0x155   :  { %2680 = vmatprep.subr.bf16.mxu0 %v6003_v27  ;;  %3452 = vmatprep.subr.bf16.mxu1 %v6006_v28  ;;  %v6071_v26 = vld [vmem:[%s7523_s3 + $0x28] sm:$0xff]   ;;  %v6074_v28 = vld [vmem:[%s7523_s3 + $0x70] sm:$0xff]  }
 0x156   :  { %v6073_v27 = vld [vmem:[%s7523_s3 + $0xa8] sm:$0xff]  }
 0x158   :  { %2681 = vmatpush1.bf16.msra.mxu0 %v6001_v29  ;;  %3453 = vmatpush1.bf16.msra.mxu1 %v6004_v30  ;;  %v6076_v29 = vld [vmem:[%s7523_s3 + $0xf0] sm:$0xff]   ;;  %v6037_v30 = vld [vmem:[%s7522_s0 + $0xc0] ss:$28 sps:$4 sm:$0xff]  }
 0x159   :  { %2682 = vmatprep.subr.bf16.mxu0 %v6015_v31  ;;  %3454 = vmatprep.subr.bf16.mxu1 %v6018_v32  ;;  %v6075_v31 = vld [vmem:[%s7523_s3 + $0x30] sm:$0xff]  }
 0x15a   :  { %2540 = vmatmul.mubr.bf16.gmra.mrb[12].mxu0 %v5961_v33  ;;  %3312 = vmatmul.mubr.bf16.gmra.mrb[12].mxu1 %v5961_v33  ;;  %v6077_v32 = vld [vmem:[%s7523_s3 + $0xb0] sm:$0xff]   ;;  %v6078_v33 = vld [vmem:[%s7523_s3 + $0x78] sm:$0xff]  }
 0x15b   :  { %2549 = vmatprep.mubr.bf16.mxu0 %v5962_v34  ;;  %3321 = vmatprep.mubr.bf16.mxu1 %v5962_v34  ;;  %v6080_v34 = vld [vmem:[%s7523_s3 + $0xf8] sm:$0xff]  }
 0x15c   :  { %2683 = vmatpush1.bf16.msra.mxu0 %v6013_v35  ;;  %3455 = vmatpush1.bf16.msra.mxu1 %v6016_v36  ;;  %v6079_v35 = vld [vmem:[%s7523_s3 + $0x38] sm:$0xff]  }
 0x15d   :  { %2684 = vmatprep.subr.bf16.mxu0 %v6027_v37  ;;  %3456 = vmatprep.subr.bf16.mxu1 %v6030_v38  ;;  %v6081_v36 = vld [vmem:[%s7523_s3 + $0xb8] sm:$0xff]   ;;  %v6039_v38 = vld [vmem:[%s7522_s0 + $0x130] ss:$28 sps:$4 sm:$0xff]  }
 0x15e   :  { %v6038_v37 = vld [vmem:[%s7522_s0 + $0xf8] ss:$28 sps:$4 sm:$0xff]  }
 0x160   :  { %2685 = vmatpush1.bf16.msra.mxu0 %v6025_v39  ;;  %3457 = vmatpush1.bf16.msra.mxu1 %v6028_v40  ;;  %v6040_v39 = vld [vmem:[%s7522_s0 + $0x168] ss:$28 sps:$4 sm:$0xff]   ;;  %v6041_v40 = vld [vmem:[%s7522_s0 + $0x1a0] ss:$28 sps:$4 sm:$0xff]  }
 0x161   :  { %4817 = vmatprep.subr.bf16.mxu0 %v6046_v57  ;;  %4929 = vmatprep.subr.bf16.mxu1 %v6049_v60 }
 0x162   :  { %2550 = vmatmul.mubr.bf16.gmra.mrb[16].mxu0 %v5964_v41  ;;  %3322 = vmatmul.mubr.bf16.gmra.mrb[16].mxu1 %v5964_v41  ;;  %v6042_v41 = vld [vmem:[%s7522_s0 + $0x1d8] ss:$28 sps:$4 sm:$0xff]  }
 0x163   :  { %2559 = vmatprep.mubr.bf16.mxu0 %v5971_v42  ;;  %3331 = vmatprep.mubr.bf16.mxu1 %v5971_v42  ;;  %v6043_v42 = vld [vmem:[%s7522_s0 + $0x210] ss:$28 sps:$4 sm:$0xff]  }
 0x16a   :  { %2560 = vmatmul.mubr.bf16.gmra.mrb[20].mxu0 %v5973_v43  ;;  %3332 = vmatmul.mubr.bf16.gmra.mrb[20].mxu1 %v5973_v43  ;;  %v6044_v43 = vld [vmem:[%s7522_s0 + $0x248] ss:$28 sps:$4 sm:$0xff]  }
 0x16b   :  { %2569 = vmatprep.mubr.bf16.mxu0 %v5974_v44  ;;  %3341 = vmatprep.mubr.bf16.mxu1 %v5974_v44  ;;  %v6045_v44 = vld [vmem:[%s7522_s0 + $0x280] ss:$28 sps:$4 sm:$0xff]  }
 0x172   :  { %2570 = vmatmul.mubr.bf16.gmra.mrb[24].mxu0 %v5976_v45  ;;  %3342 = vmatmul.mubr.bf16.gmra.mrb[24].mxu1 %v5976_v45  ;;  %v6048_v45 = vld [vmem:[%s7522_s0 + $0x2b8] ss:$28 sps:$4 sm:$0xff]  }
 0x173   :  { %2579 = vmatprep.mubr.bf16.mxu0 %v5983_v46  ;;  %3351 = vmatprep.mubr.bf16.mxu1 %v5983_v46  ;;  %v6051_v46 = vld [vmem:[%s7522_s0 + $0x2f0] ss:$28 sps:$4 sm:$0xff]  }
 0x17a   :  { %2580 = vmatmul.mubr.bf16.gmra.mrb[28].mxu0 %v5985_v47  ;;  %3352 = vmatmul.mubr.bf16.gmra.mrb[28].mxu1 %v5985_v47  ;;  %v6054_v47 = vld [vmem:[%s7522_s0 + $0x328] ss:$28 sps:$4 sm:$0xff]  }
 0x17b   :  { %2589 = vmatprep.mubr.bf16.mxu0 %v5986_v48  ;;  %3361 = vmatprep.mubr.bf16.mxu1 %v5986_v48  ;;  %v6057_v48 = vld [vmem:[%s7522_s0 + $0x360] ss:$28 sps:$4 sm:$0xff]  }
 0x182   :  { %2590 = vmatmul.mubr.bf16.gmra.mrb[32].mxu0 %v5988_v49  ;;  %3362 = vmatmul.mubr.bf16.gmra.mrb[32].mxu1 %v5988_v49  ;;  %v375_v49 = vlaneseq }
 0x183   :  { %2599 = vmatprep.mubr.bf16.mxu0 %v5995_v50  ;;  %3371 = vmatprep.mubr.bf16.mxu1 %v5995_v50 }
 0x184   :  { %v376_v50 = vshrl.u32 %v375_v49, 7 }
 0x18a   :  { %2600 = vmatmul.mubr.bf16.gmra.mrb[36].mxu0 %v5997_v51  ;;  %3372 = vmatmul.mubr.bf16.gmra.mrb[36].mxu1 %v5997_v51  ;;  %v377_v51 = vsub.s32 0, %v376_v50 }
 0x18b   :  { %2609 = vmatprep.mubr.bf16.mxu0 %v5998_v52  ;;  %3381 = vmatprep.mubr.bf16.mxu1 %v5998_v52  ;;  %v385_v52 = vsub.s32 2, %v376_v50 }
 0x192   :  { %2610 = vmatmul.mubr.bf16.gmra.mrb[40].mxu0 %v6000_v53  ;;  %3382 = vmatmul.mubr.bf16.gmra.mrb[40].mxu1 %v6000_v53  ;;  %v373_v53 = vld [vmem:[%s7524_s2] sm:$0xf] }
 0x193   :  { %2619 = vmatprep.mubr.bf16.mxu0 %v6007_v54  ;;  %3391 = vmatprep.mubr.bf16.mxu1 %v6007_v54  ;;  %v381_v54 = vsub.s32 1, %v376_v50  ;;  %v7254_v57 = vrot.slane %v373_v53, %v385_v52 }
 0x19a   :  { %2620 = vmatmul.mubr.bf16.gmra.mrb[44].mxu0 %v6009_v55  ;;  %3392 = vmatmul.mubr.bf16.gmra.mrb[44].mxu1 %v6009_v55  ;;  %v389_v55 = vsub.s32 3, %v376_v50 }
 0x19b   :  { %2629 = vmatprep.mubr.bf16.mxu0 %v6010_v56  ;;  %3401 = vmatprep.mubr.bf16.mxu1 %v6010_v56  ;;  %v7252_v56 = vrot.slane %v373_v53, %v377_v51 }
 0x1a2   :  { %2630 = vmatmul.mubr.bf16.gmra.mrb[48].mxu0 %v6012_v58  ;;  %3402 = vmatmul.mubr.bf16.gmra.mrb[48].mxu1 %v6012_v58  ;;  %v7256_v58 = vrot.slane %v373_v53, %v381_v54 }
 0x1a3   :  { %2639 = vmatprep.mubr.bf16.mxu0 %v6019_v59  ;;  %3411 = vmatprep.mubr.bf16.mxu1 %v6019_v59  ;;  %v7258_v59 = vrot.slane %v373_v53, %v389_v55 }
 0x1aa   :  { %2640 = vmatmul.mubr.bf16.gmra.mrb[52].mxu0 %v6021_v61  ;;  %3412 = vmatmul.mubr.bf16.gmra.mrb[52].mxu1 %v6021_v61 }
 0x1ab   :  { %2649 = vmatprep.mubr.bf16.mxu0 %v6022_v62  ;;  %3421 = vmatprep.mubr.bf16.mxu1 %v6022_v62 }
 0x1b2   :  { %2650 = vmatmul.mubr.bf16.gmra.mrb[56].mxu0 %v6024_v63  ;;  %3422 = vmatmul.mubr.bf16.gmra.mrb[56].mxu1 %v6024_v63 }
 0x1b3   :  { %2659 = vmatprep.mubr.bf16.mxu0 %v6031_v0  ;;  %3431 = vmatprep.mubr.bf16.mxu1 %v6031_v0 }
 0x1ba   :  { %2660 = vmatmul.mubr.bf16.gmra.mrb[60].mxu0 %v6033_v1  ;;  %3432 = vmatmul.mubr.bf16.gmra.mrb[60].mxu1 %v6033_v1 }
 0x1bb   :  { %2702 = vmatprep.mubr.bf16.mxu0 %v6082_v2  ;;  %3474 = vmatprep.mubr.bf16.mxu1 %v6082_v2 }
 0x1c2   :  { %2703 = vmatmul.mubr.bf16.vlgmr.msra.gmra.mrb[0].mxu0 %v6034_v3  ;;  %3475 = vmatmul.mubr.bf16.vlgmr.msra.gmra.mrb[0].mxu1 %v6034_v3 }
 0x1c3   :  { %2712 = vmatprep.mubr.bf16.mxu0 %v6082_v2  ;;  %3484 = vmatprep.mubr.bf16.mxu1 %v6082_v2 }
 0x1c4   :  { %4818 = vmatpush3.bf16.msra.mxu0 %v6047_v4  ;;  %4930 = vmatpush3.bf16.msra.mxu1 %v6050_v5 }
 0x1c5   :  { %4819 = vmatprep.subr.bf16.mxu0 %v6052_v6  ;;  %4931 = vmatprep.subr.bf16.mxu1 %v6055_v7 }
 0x1c8   :  { %4820 = vmatpush3.bf16.msra.mxu0 %v6053_v8  ;;  %4932 = vmatpush3.bf16.msra.mxu1 %v6056_v9 }
 0x1c9   :  { %4821 = vmatprep.subr.bf16.mxu0 %v6058_v10  ;;  %4933 = vmatprep.subr.bf16.mxu1 %v6060_v11 }
 0x1ca   :  { %2713 = vmatmul.mubr.bf16.gmra.mrb[4].mxu0 %v6035_v12  ;;  %3485 = vmatmul.mubr.bf16.gmra.mrb[4].mxu1 %v6035_v12 }
 0x1cb   :  { %2722 = vmatprep.mubr.bf16.mxu0 %v6082_v2  ;;  %3494 = vmatprep.mubr.bf16.mxu1 %v6082_v2 }
 0x1cc   :  { %4822 = vmatpush3.bf16.msra.mxu0 %v6059_v13  ;;  %4934 = vmatpush3.bf16.msra.mxu1 %v6061_v14 }
 0x1cd   :  { %4823 = vmatprep.subr.bf16.mxu0 %v6062_v15  ;;  %4935 = vmatprep.subr.bf16.mxu1 %v6064_v16 }
 0x1d0   :  { %4824 = vmatpush3.bf16.msra.mxu0 %v6063_v17  ;;  %4936 = vmatpush3.bf16.msra.mxu1 %v6065_v18 }
 0x1d1   :  { %4825 = vmatprep.subr.bf16.mxu0 %v6066_v19  ;;  %4937 = vmatprep.subr.bf16.mxu1 %v6068_v20 }
 0x1d2   :  { %2723 = vmatmul.mubr.bf16.gmra.mrb[8].mxu0 %v6036_v21  ;;  %3495 = vmatmul.mubr.bf16.gmra.mrb[8].mxu1 %v6036_v21 }
 0x1d3   :  { %2732 = vmatprep.mubr.bf16.mxu0 %v6082_v2  ;;  %3504 = vmatprep.mubr.bf16.mxu1 %v6082_v2 }
 0x1d4   :  { %4826 = vmatpush3.bf16.msra.mxu0 %v6067_v22  ;;  %4938 = vmatpush3.bf16.msra.mxu1 %v6069_v23 }
 0x1d5   :  { %4827 = vmatprep.subr.bf16.mxu0 %v6070_v24  ;;  %4939 = vmatprep.subr.bf16.mxu1 %v6072_v25 }
 0x1d8   :  { %4828 = vmatpush3.bf16.msra.mxu0 %v6071_v26  ;;  %4940 = vmatpush3.bf16.msra.mxu1 %v6073_v27 }
 0x1d9   :  { %4829 = vmatprep.subr.bf16.mxu0 %v6074_v28  ;;  %4941 = vmatprep.subr.bf16.mxu1 %v6076_v29 }
 0x1da   :  { %2733 = vmatmul.mubr.bf16.gmra.mrb[12].mxu0 %v6037_v30  ;;  %3505 = vmatmul.mubr.bf16.gmra.mrb[12].mxu1 %v6037_v30 }
 0x1db   :  { %2742 = vmatprep.mubr.bf16.mxu0 %v6082_v2  ;;  %3514 = vmatprep.mubr.bf16.mxu1 %v6082_v2 }
 0x1dc   :  { %4830 = vmatpush3.bf16.msra.mxu0 %v6075_v31  ;;  %4942 = vmatpush3.bf16.msra.mxu1 %v6077_v32 }
 0x1dd   :  { %4831 = vmatprep.subr.bf16.mxu0 %v6078_v33  ;;  %4943 = vmatprep.subr.bf16.mxu1 %v6080_v34 }
 0x1e0   :  { %4832 = vmatpush3.bf16.msra.mxu0 %v6079_v35  ;;  %4944 = vmatpush3.bf16.msra.mxu1 %v6081_v36 }
 0x1e2   :  { %2743 = vmatmul.mubr.bf16.gmra.mrb[16].mxu0 %v6038_v37  ;;  %3515 = vmatmul.mubr.bf16.gmra.mrb[16].mxu1 %v6038_v37 }
 0x1e3   :  { %2752 = vmatprep.mubr.bf16.mxu0 %v6082_v2  ;;  %3524 = vmatprep.mubr.bf16.mxu1 %v6082_v2 }
 0x1ea   :  { %2753 = vmatmul.mubr.bf16.gmra.mrb[20].mxu0 %v6039_v38  ;;  %3525 = vmatmul.mubr.bf16.gmra.mrb[20].mxu1 %v6039_v38 }
 0x1eb   :  { %2762 = vmatprep.mubr.bf16.mxu0 %v6082_v2  ;;  %3534 = vmatprep.mubr.bf16.mxu1 %v6082_v2 }
 0x1f2   :  { %2763 = vmatmul.mubr.bf16.gmra.mrb[24].mxu0 %v6040_v39  ;;  %3535 = vmatmul.mubr.bf16.gmra.mrb[24].mxu1 %v6040_v39 }
 0x1f3   :  { %2772 = vmatprep.mubr.bf16.mxu0 %v6082_v2  ;;  %3544 = vmatprep.mubr.bf16.mxu1 %v6082_v2 }
 0x1fa   :  { %2773 = vmatmul.mubr.bf16.gmra.mrb[28].mxu0 %v6041_v40  ;;  %3545 = vmatmul.mubr.bf16.gmra.mrb[28].mxu1 %v6041_v40 }
 0x1fb   :  { %2782 = vmatprep.mubr.bf16.mxu0 %v6082_v2  ;;  %3554 = vmatprep.mubr.bf16.mxu1 %v6082_v2 }
 0x202   :  { %2783 = vmatmul.mubr.bf16.gmra.mrb[32].mxu0 %v6042_v41  ;;  %3555 = vmatmul.mubr.bf16.gmra.mrb[32].mxu1 %v6042_v41 }
 0x203   :  { %2792 = vmatprep.mubr.bf16.mxu0 %v6082_v2  ;;  %3564 = vmatprep.mubr.bf16.mxu1 %v6082_v2 }
 0x20a   :  { %2793 = vmatmul.mubr.bf16.gmra.mrb[36].mxu0 %v6043_v42  ;;  %3565 = vmatmul.mubr.bf16.gmra.mrb[36].mxu1 %v6043_v42 }
 0x20b   :  { %2802 = vmatprep.mubr.bf16.mxu0 %v6082_v2  ;;  %3574 = vmatprep.mubr.bf16.mxu1 %v6082_v2 }
 0x212   :  { %2803 = vmatmul.mubr.bf16.gmra.mrb[40].mxu0 %v6044_v43  ;;  %3575 = vmatmul.mubr.bf16.gmra.mrb[40].mxu1 %v6044_v43 }
 0x213   :  { %2812 = vmatprep.mubr.bf16.mxu0 %v6082_v2  ;;  %3584 = vmatprep.mubr.bf16.mxu1 %v6082_v2 }
 0x21a   :  { %2813 = vmatmul.mubr.bf16.gmra.mrb[44].mxu0 %v6045_v44  ;;  %3585 = vmatmul.mubr.bf16.gmra.mrb[44].mxu1 %v6045_v44 }
 0x21b   :  { %2822 = vmatprep.mubr.bf16.mxu0 %v6082_v2  ;;  %3594 = vmatprep.mubr.bf16.mxu1 %v6082_v2 }
 0x222   :  { %2823 = vmatmul.mubr.bf16.gmra.mrb[48].mxu0 %v6048_v45  ;;  %3595 = vmatmul.mubr.bf16.gmra.mrb[48].mxu1 %v6048_v45 }
 0x223   :  { %2832 = vmatprep.mubr.bf16.mxu0 %v6082_v2  ;;  %3604 = vmatprep.mubr.bf16.mxu1 %v6082_v2 }
 0x22a   :  { %2833 = vmatmul.mubr.bf16.gmra.mrb[52].mxu0 %v6051_v46  ;;  %3605 = vmatmul.mubr.bf16.gmra.mrb[52].mxu1 %v6051_v46 }
 0x22b   :  { %2842 = vmatprep.mubr.bf16.mxu0 %v6082_v2  ;;  %3614 = vmatprep.mubr.bf16.mxu1 %v6082_v2 }
 0x232   :  { %2843 = vmatmul.mubr.bf16.gmra.mrb[56].mxu0 %v6054_v47  ;;  %3615 = vmatmul.mubr.bf16.gmra.mrb[56].mxu1 %v6054_v47 }
 0x233   :  { %2852 = vmatprep.mubr.bf16.mxu0 %v6082_v2  ;;  %3624 = vmatprep.mubr.bf16.mxu1 %v6082_v2 }
 0x23a   :  { %2853 = vmatmul.mubr.bf16.gmra.mrb[60].mxu0 %v6057_v48  ;;  %3625 = vmatmul.mubr.bf16.gmra.mrb[60].mxu1 %v6057_v48 }
 0x295   :  { %v2704_v60 = vpop.f32.mrb[0].mxu0  ;;  %v3476_v61 = vpop.f32.mrb[0].mxu1 }
 0x296   :  { %v5041_v62 = vadd.f32 %v2704_v60, %v7252_v56  ;;  %v5105_v63 = vadd.f32 %v3476_v61, %v7254_v57  ;;  %v2706_v0 = vpop.f32.mrb[1].mxu0  ;;  %v3478_v1 = vpop.f32.mrb[1].mxu1 }
 0x297   :  { %v5042_v2 = vadd.f32 %v2706_v0, %v7256_v58  ;;  %v5106_v3 = vadd.f32 %v3478_v1, %v7258_v59  ;;  %v2708_v4 = vpop.f32.mrb[2].mxu0  ;;  %v3480_v5 = vpop.f32.mrb[2].mxu1 }
 0x298   :  { %v5043_v6 = vadd.f32 %v2708_v4, %v7252_v56  ;;  %v5107_v7 = vadd.f32 %v3480_v5, %v7254_v57  ;;  %v2710_v8 = vpop.f32.mrb[3].mxu0  ;;  %v3482_v9 = vpop.f32.mrb[3].mxu1  ;;  %v3635_v12 = vmax.f32 %v5041_v62, 0.0  ;;  %v3637_v13 = vmax.f32 %v5105_v63, 0.0 }
 0x299   :  { %v5044_v10 = vadd.f32 %v2710_v8, %v7256_v58  ;;  %v5108_v11 = vadd.f32 %v3482_v9, %v7258_v59  ;;  %v3636_v16 = vmax.f32 %v5042_v2, 0.0  ;;  %v3638_v17 = vmax.f32 %v5106_v3, 0.0 }
 0x29a   :  { %v3639_v14 = vmax.f32 %v5043_v6, 0.0  ;;  %v3641_v15 = vmax.f32 %v5107_v7, 0.0 }
 0x29b   :  { %v3640_v18 = vmax.f32 %v5044_v10, 0.0  ;;  %v3642_v19 = vmax.f32 %v5108_v11, 0.0 }
 0x29c   :  { %v3763_v20 = vpack.c.bf16 %v3639_v14, %v3635_v12  ;;  %v3765_v21 = vpack.c.bf16 %v3641_v15, %v3637_v13 }
 0x29d   :  { %v3764_v22 = vpack.c.bf16 %v3640_v18, %v3636_v16  ;;  %v3766_v23 = vpack.c.bf16 %v3642_v19, %v3638_v17  ;;  %v2714_v24 = vpop.f32.mrb[4].mxu0  ;;  %v3486_v25 = vpop.f32.mrb[4].mxu1 }
 0x29e   :  { %v5045_v26 = vadd.f32 %v2714_v24, %v7252_v56  ;;  %v5109_v27 = vadd.f32 %v3486_v25, %v7254_v57  ;;  %v2716_v28 = vpop.f32.mrb[5].mxu0  ;;  %v3488_v29 = vpop.f32.mrb[5].mxu1 }
 0x29f   :  { %v5046_v30 = vadd.f32 %v2716_v28, %v7256_v58  ;;  %v5110_v31 = vadd.f32 %v3488_v29, %v7258_v59  ;;  %v2718_v32 = vpop.f32.mrb[6].mxu0  ;;  %v3490_v33 = vpop.f32.mrb[6].mxu1  ;;  %4122 = vmatprep.mubr.bf16.mxu0 %v3764_v22  ;;  %4283 = vmatprep.mubr.bf16.mxu1 %v3766_v23 }
 0x2a0   :  { %v5047_v34 = vadd.f32 %v2718_v32, %v7252_v56  ;;  %v5111_v35 = vadd.f32 %v3490_v33, %v7254_v57  ;;  %v2720_v36 = vpop.f32.mrb[7].mxu0  ;;  %v3492_v37 = vpop.f32.mrb[7].mxu1  ;;  %4123 = vmatmul.mubr.bf16.vlgmr.msra.gmra.mrb[64].mxu0 %v3763_v20  ;;  %4284 = vmatmul.mubr.bf16.vlgmr.msra.gmra.mrb[64].mxu1 %v3765_v21  ;;  %v3643_v40 = vmax.f32 %v5045_v26, 0.0  ;;  %v3645_v41 = vmax.f32 %v5109_v27, 0.0 }
 0x2a1   :  { %v5048_v38 = vadd.f32 %v2720_v36, %v7256_v58  ;;  %v5112_v39 = vadd.f32 %v3492_v37, %v7258_v59  ;;  %v3644_v44 = vmax.f32 %v5046_v30, 0.0  ;;  %v3646_v45 = vmax.f32 %v5110_v31, 0.0 }
 0x2a2   :  { %v3647_v42 = vmax.f32 %v5047_v34, 0.0  ;;  %v3649_v43 = vmax.f32 %v5111_v35, 0.0 }
 0x2a3   :  { %v3648_v46 = vmax.f32 %v5048_v38, 0.0  ;;  %v3650_v47 = vmax.f32 %v5112_v39, 0.0 }
 0x2a4   :  { %v3767_v48 = vpack.c.bf16 %v3647_v42, %v3643_v40  ;;  %v3769_v49 = vpack.c.bf16 %v3649_v43, %v3645_v41 }
 0x2a5   :  { %v3768_v50 = vpack.c.bf16 %v3648_v46, %v3644_v44  ;;  %v3770_v51 = vpack.c.bf16 %v3650_v47, %v3646_v45  ;;  %v2724_v52 = vpop.f32.mrb[8].mxu0  ;;  %v3496_v53 = vpop.f32.mrb[8].mxu1 }
 0x2a6   :  { %v5049_v54 = vadd.f32 %v2724_v52, %v7252_v56  ;;  %v5113_v55 = vadd.f32 %v3496_v53, %v7254_v57  ;;  %v2726_v60 = vpop.f32.mrb[9].mxu0  ;;  %v3498_v61 = vpop.f32.mrb[9].mxu1 }
 0x2a7   :  { %v5050_v62 = vadd.f32 %v2726_v60, %v7256_v58  ;;  %v5114_v63 = vadd.f32 %v3498_v61, %v7258_v59  ;;  %v2728_v0 = vpop.f32.mrb[10].mxu0  ;;  %v3500_v1 = vpop.f32.mrb[10].mxu1  ;;  %4130 = vmatprep.mubr.bf16.mxu0 %v3768_v50  ;;  %4291 = vmatprep.mubr.bf16.mxu1 %v3770_v51 }
 0x2a8   :  { %v5051_v2 = vadd.f32 %v2728_v0, %v7252_v56  ;;  %v5115_v3 = vadd.f32 %v3500_v1, %v7254_v57  ;;  %v2730_v4 = vpop.f32.mrb[11].mxu0  ;;  %v3502_v5 = vpop.f32.mrb[11].mxu1  ;;  %4131 = vmatmul.mubr.bf16.gmra.mrb[68].mxu0 %v3767_v48  ;;  %4292 = vmatmul.mubr.bf16.gmra.mrb[68].mxu1 %v3769_v49  ;;  %v3651_v8 = vmax.f32 %v5049_v54, 0.0  ;;  %v3653_v9 = vmax.f32 %v5113_v55, 0.0 }
 0x2a9   :  { %v5052_v6 = vadd.f32 %v2730_v4, %v7256_v58  ;;  %v5116_v7 = vadd.f32 %v3502_v5, %v7258_v59  ;;  %v3652_v12 = vmax.f32 %v5050_v62, 0.0  ;;  %v3654_v13 = vmax.f32 %v5114_v63, 0.0 }
 0x2aa   :  { %v3655_v10 = vmax.f32 %v5051_v2, 0.0  ;;  %v3657_v11 = vmax.f32 %v5115_v3, 0.0 }
 0x2ab   :  { %v3656_v14 = vmax.f32 %v5052_v6, 0.0  ;;  %v3658_v15 = vmax.f32 %v5116_v7, 0.0 }
 0x2ac   :  { %v3771_v16 = vpack.c.bf16 %v3655_v10, %v3651_v8  ;;  %v3773_v17 = vpack.c.bf16 %v3657_v11, %v3653_v9 }
 0x2ad   :  { %v3772_v18 = vpack.c.bf16 %v3656_v14, %v3652_v12  ;;  %v3774_v19 = vpack.c.bf16 %v3658_v15, %v3654_v13  ;;  %v2734_v20 = vpop.f32.mrb[12].mxu0  ;;  %v3506_v21 = vpop.f32.mrb[12].mxu1 }
 0x2ae   :  { %v5053_v22 = vadd.f32 %v2734_v20, %v7252_v56  ;;  %v5117_v23 = vadd.f32 %v3506_v21, %v7254_v57  ;;  %v2736_v24 = vpop.f32.mrb[13].mxu0  ;;  %v3508_v25 = vpop.f32.mrb[13].mxu1 }
 0x2af   :  { %v5054_v26 = vadd.f32 %v2736_v24, %v7256_v58  ;;  %v5118_v27 = vadd.f32 %v3508_v25, %v7258_v59  ;;  %v2738_v28 = vpop.f32.mrb[14].mxu0  ;;  %v3510_v29 = vpop.f32.mrb[14].mxu1  ;;  %4138 = vmatprep.mubr.bf16.mxu0 %v3772_v18  ;;  %4299 = vmatprep.mubr.bf16.mxu1 %v3774_v19 }
 0x2b0   :  { %v5055_v30 = vadd.f32 %v2738_v28, %v7252_v56  ;;  %v5119_v31 = vadd.f32 %v3510_v29, %v7254_v57  ;;  %v2740_v32 = vpop.f32.mrb[15].mxu0  ;;  %v3512_v33 = vpop.f32.mrb[15].mxu1  ;;  %4139 = vmatmul.mubr.bf16.gmra.mrb[72].mxu0 %v3771_v16  ;;  %4300 = vmatmul.mubr.bf16.gmra.mrb[72].mxu1 %v3773_v17  ;;  %v3659_v36 = vmax.f32 %v5053_v22, 0.0  ;;  %v3661_v37 = vmax.f32 %v5117_v23, 0.0 }
 0x2b1   :  { %v5056_v34 = vadd.f32 %v2740_v32, %v7256_v58  ;;  %v5120_v35 = vadd.f32 %v3512_v33, %v7258_v59  ;;  %v3660_v40 = vmax.f32 %v5054_v26, 0.0  ;;  %v3662_v41 = vmax.f32 %v5118_v27, 0.0 }
 0x2b2   :  { %v3663_v38 = vmax.f32 %v5055_v30, 0.0  ;;  %v3665_v39 = vmax.f32 %v5119_v31, 0.0 }
 0x2b3   :  { %v3664_v42 = vmax.f32 %v5056_v34, 0.0  ;;  %v3666_v43 = vmax.f32 %v5120_v35, 0.0 }
 0x2b4   :  { %v3775_v44 = vpack.c.bf16 %v3663_v38, %v3659_v36  ;;  %v3777_v45 = vpack.c.bf16 %v3665_v39, %v3661_v37 }
 0x2b5   :  { %v3776_v46 = vpack.c.bf16 %v3664_v42, %v3660_v40  ;;  %v3778_v47 = vpack.c.bf16 %v3666_v43, %v3662_v41  ;;  %v2744_v48 = vpop.f32.mrb[16].mxu0  ;;  %v3516_v49 = vpop.f32.mrb[16].mxu1 }
 0x2b6   :  { %v5057_v50 = vadd.f32 %v2744_v48, %v7252_v56  ;;  %v5121_v51 = vadd.f32 %v3516_v49, %v7254_v57  ;;  %v2746_v52 = vpop.f32.mrb[17].mxu0  ;;  %v3518_v53 = vpop.f32.mrb[17].mxu1 }
 0x2b7   :  { %v5058_v54 = vadd.f32 %v2746_v52, %v7256_v58  ;;  %v5122_v55 = vadd.f32 %v3518_v53, %v7258_v59  ;;  %v2748_v60 = vpop.f32.mrb[18].mxu0  ;;  %v3520_v61 = vpop.f32.mrb[18].mxu1  ;;  %4146 = vmatprep.mubr.bf16.mxu0 %v3776_v46  ;;  %4307 = vmatprep.mubr.bf16.mxu1 %v3778_v47 }
 0x2b8   :  { %v5059_v62 = vadd.f32 %v2748_v60, %v7252_v56  ;;  %v5123_v63 = vadd.f32 %v3520_v61, %v7254_v57  ;;  %v2750_v0 = vpop.f32.mrb[19].mxu0  ;;  %v3522_v1 = vpop.f32.mrb[19].mxu1  ;;  %4147 = vmatmul.mubr.bf16.gmra.mrb[76].mxu0 %v3775_v44  ;;  %4308 = vmatmul.mubr.bf16.gmra.mrb[76].mxu1 %v3777_v45  ;;  %v3667_v4 = vmax.f32 %v5057_v50, 0.0  ;;  %v3669_v5 = vmax.f32 %v5121_v51, 0.0 }
 0x2b9   :  { %v5060_v2 = vadd.f32 %v2750_v0, %v7256_v58  ;;  %v5124_v3 = vadd.f32 %v3522_v1, %v7258_v59  ;;  %v3668_v8 = vmax.f32 %v5058_v54, 0.0  ;;  %v3670_v9 = vmax.f32 %v5122_v55, 0.0 }
 0x2ba   :  { %v3671_v6 = vmax.f32 %v5059_v62, 0.0  ;;  %v3673_v7 = vmax.f32 %v5123_v63, 0.0 }
 0x2bb   :  { %v3672_v10 = vmax.f32 %v5060_v2, 0.0  ;;  %v3674_v11 = vmax.f32 %v5124_v3, 0.0 }
 0x2bc   :  { %v3779_v12 = vpack.c.bf16 %v3671_v6, %v3667_v4  ;;  %v3781_v13 = vpack.c.bf16 %v3673_v7, %v3669_v5 }
 0x2bd   :  { %v3780_v14 = vpack.c.bf16 %v3672_v10, %v3668_v8  ;;  %v3782_v15 = vpack.c.bf16 %v3674_v11, %v3670_v9  ;;  %v2754_v16 = vpop.f32.mrb[20].mxu0  ;;  %v3526_v17 = vpop.f32.mrb[20].mxu1 }
 0x2be   :  { %v5061_v18 = vadd.f32 %v2754_v16, %v7252_v56  ;;  %v5125_v19 = vadd.f32 %v3526_v17, %v7254_v57  ;;  %v2756_v20 = vpop.f32.mrb[21].mxu0  ;;  %v3528_v21 = vpop.f32.mrb[21].mxu1 }
 0x2bf   :  { %v5062_v22 = vadd.f32 %v2756_v20, %v7256_v58  ;;  %v5126_v23 = vadd.f32 %v3528_v21, %v7258_v59  ;;  %v2758_v24 = vpop.f32.mrb[22].mxu0  ;;  %v3530_v25 = vpop.f32.mrb[22].mxu1  ;;  %4154 = vmatprep.mubr.bf16.mxu0 %v3780_v14  ;;  %4315 = vmatprep.mubr.bf16.mxu1 %v3782_v15 }
 0x2c0   :  { %v5063_v26 = vadd.f32 %v2758_v24, %v7252_v56  ;;  %v5127_v27 = vadd.f32 %v3530_v25, %v7254_v57  ;;  %v2760_v28 = vpop.f32.mrb[23].mxu0  ;;  %v3532_v29 = vpop.f32.mrb[23].mxu1  ;;  %4155 = vmatmul.mubr.bf16.gmra.mrb[80].mxu0 %v3779_v12  ;;  %4316 = vmatmul.mubr.bf16.gmra.mrb[80].mxu1 %v3781_v13  ;;  %v3675_v32 = vmax.f32 %v5061_v18, 0.0  ;;  %v3677_v33 = vmax.f32 %v5125_v19, 0.0 }
 0x2c1   :  { %v5064_v30 = vadd.f32 %v2760_v28, %v7256_v58  ;;  %v5128_v31 = vadd.f32 %v3532_v29, %v7258_v59  ;;  %v3676_v36 = vmax.f32 %v5062_v22, 0.0  ;;  %v3678_v37 = vmax.f32 %v5126_v23, 0.0 }
 0x2c2   :  { %v3679_v34 = vmax.f32 %v5063_v26, 0.0  ;;  %v3681_v35 = vmax.f32 %v5127_v27, 0.0 }
 0x2c3   :  { %v3680_v38 = vmax.f32 %v5064_v30, 0.0  ;;  %v3682_v39 = vmax.f32 %v5128_v31, 0.0 }
 0x2c4   :  { %v3783_v40 = vpack.c.bf16 %v3679_v34, %v3675_v32  ;;  %v3785_v41 = vpack.c.bf16 %v3681_v35, %v3677_v33 }
 0x2c5   :  { %v3784_v42 = vpack.c.bf16 %v3680_v38, %v3676_v36  ;;  %v3786_v43 = vpack.c.bf16 %v3682_v39, %v3678_v37  ;;  %v2764_v44 = vpop.f32.mrb[24].mxu0  ;;  %v3536_v45 = vpop.f32.mrb[24].mxu1 }
 0x2c6   :  { %v5065_v46 = vadd.f32 %v2764_v44, %v7252_v56  ;;  %v5129_v47 = vadd.f32 %v3536_v45, %v7254_v57  ;;  %v2766_v48 = vpop.f32.mrb[25].mxu0  ;;  %v3538_v49 = vpop.f32.mrb[25].mxu1 }
 0x2c7   :  { %v5066_v50 = vadd.f32 %v2766_v48, %v7256_v58  ;;  %v5130_v51 = vadd.f32 %v3538_v49, %v7258_v59  ;;  %v2768_v52 = vpop.f32.mrb[26].mxu0  ;;  %v3540_v53 = vpop.f32.mrb[26].mxu1  ;;  %4162 = vmatprep.mubr.bf16.mxu0 %v3784_v42  ;;  %4323 = vmatprep.mubr.bf16.mxu1 %v3786_v43 }
 0x2c8   :  { %v5067_v54 = vadd.f32 %v2768_v52, %v7252_v56  ;;  %v5131_v55 = vadd.f32 %v3540_v53, %v7254_v57  ;;  %v2770_v60 = vpop.f32.mrb[27].mxu0  ;;  %v3542_v61 = vpop.f32.mrb[27].mxu1  ;;  %4163 = vmatmul.mubr.bf16.gmra.mrb[84].mxu0 %v3783_v40  ;;  %4324 = vmatmul.mubr.bf16.gmra.mrb[84].mxu1 %v3785_v41  ;;  %v3683_v0 = vmax.f32 %v5065_v46, 0.0  ;;  %v3685_v1 = vmax.f32 %v5129_v47, 0.0 }
 0x2c9   :  { %v5068_v62 = vadd.f32 %v2770_v60, %v7256_v58  ;;  %v5132_v63 = vadd.f32 %v3542_v61, %v7258_v59  ;;  %v3684_v4 = vmax.f32 %v5066_v50, 0.0  ;;  %v3686_v5 = vmax.f32 %v5130_v51, 0.0 }
 0x2ca   :  { %v3687_v2 = vmax.f32 %v5067_v54, 0.0  ;;  %v3689_v3 = vmax.f32 %v5131_v55, 0.0 }
 0x2cb   :  { %v3688_v6 = vmax.f32 %v5068_v62, 0.0  ;;  %v3690_v7 = vmax.f32 %v5132_v63, 0.0 }
 0x2cc   :  { %v3787_v8 = vpack.c.bf16 %v3687_v2, %v3683_v0  ;;  %v3789_v9 = vpack.c.bf16 %v3689_v3, %v3685_v1 }
 0x2cd   :  { %v3788_v10 = vpack.c.bf16 %v3688_v6, %v3684_v4  ;;  %v3790_v11 = vpack.c.bf16 %v3690_v7, %v3686_v5  ;;  %v2774_v12 = vpop.f32.mrb[28].mxu0  ;;  %v3546_v13 = vpop.f32.mrb[28].mxu1 }
 0x2ce   :  { %v5069_v14 = vadd.f32 %v2774_v12, %v7252_v56  ;;  %v5133_v15 = vadd.f32 %v3546_v13, %v7254_v57  ;;  %v2776_v16 = vpop.f32.mrb[29].mxu0  ;;  %v3548_v17 = vpop.f32.mrb[29].mxu1 }
 0x2cf   :  { %v5070_v18 = vadd.f32 %v2776_v16, %v7256_v58  ;;  %v5134_v19 = vadd.f32 %v3548_v17, %v7258_v59  ;;  %v2778_v20 = vpop.f32.mrb[30].mxu0  ;;  %v3550_v21 = vpop.f32.mrb[30].mxu1  ;;  %4170 = vmatprep.mubr.bf16.mxu0 %v3788_v10  ;;  %4331 = vmatprep.mubr.bf16.mxu1 %v3790_v11 }
 0x2d0   :  { %v5071_v22 = vadd.f32 %v2778_v20, %v7252_v56  ;;  %v5135_v23 = vadd.f32 %v3550_v21, %v7254_v57  ;;  %v2780_v24 = vpop.f32.mrb[31].mxu0  ;;  %v3552_v25 = vpop.f32.mrb[31].mxu1  ;;  %4171 = vmatmul.mubr.bf16.gmra.mrb[88].mxu0 %v3787_v8  ;;  %4332 = vmatmul.mubr.bf16.gmra.mrb[88].mxu1 %v3789_v9  ;;  %v3691_v28 = vmax.f32 %v5069_v14, 0.0  ;;  %v3693_v29 = vmax.f32 %v5133_v15, 0.0 }
 0x2d1   :  { %v5072_v26 = vadd.f32 %v2780_v24, %v7256_v58  ;;  %v5136_v27 = vadd.f32 %v3552_v25, %v7258_v59  ;;  %v3692_v32 = vmax.f32 %v5070_v18, 0.0  ;;  %v3694_v33 = vmax.f32 %v5134_v19, 0.0 }
 0x2d2   :  { %v3695_v30 = vmax.f32 %v5071_v22, 0.0  ;;  %v3697_v31 = vmax.f32 %v5135_v23, 0.0 }
 0x2d3   :  { %v3696_v34 = vmax.f32 %v5072_v26, 0.0  ;;  %v3698_v35 = vmax.f32 %v5136_v27, 0.0 }
 0x2d4   :  { %v3791_v36 = vpack.c.bf16 %v3695_v30, %v3691_v28  ;;  %v3793_v37 = vpack.c.bf16 %v3697_v31, %v3693_v29 }
 0x2d5   :  { %v3792_v38 = vpack.c.bf16 %v3696_v34, %v3692_v32  ;;  %v3794_v39 = vpack.c.bf16 %v3698_v35, %v3694_v33  ;;  %v2784_v40 = vpop.f32.mrb[32].mxu0  ;;  %v3556_v41 = vpop.f32.mrb[32].mxu1 }
 0x2d6   :  { %v5073_v42 = vadd.f32 %v2784_v40, %v7252_v56  ;;  %v5137_v43 = vadd.f32 %v3556_v41, %v7254_v57  ;;  %v2786_v44 = vpop.f32.mrb[33].mxu0  ;;  %v3558_v45 = vpop.f32.mrb[33].mxu1 }
 0x2d7   :  { %v5074_v46 = vadd.f32 %v2786_v44, %v7256_v58  ;;  %v5138_v47 = vadd.f32 %v3558_v45, %v7258_v59  ;;  %v2788_v48 = vpop.f32.mrb[34].mxu0  ;;  %v3560_v49 = vpop.f32.mrb[34].mxu1  ;;  %4178 = vmatprep.mubr.bf16.mxu0 %v3792_v38  ;;  %4339 = vmatprep.mubr.bf16.mxu1 %v3794_v39 }
 0x2d8   :  { %v5075_v50 = vadd.f32 %v2788_v48, %v7252_v56  ;;  %v5139_v51 = vadd.f32 %v3560_v49, %v7254_v57  ;;  %v2790_v52 = vpop.f32.mrb[35].mxu0  ;;  %v3562_v53 = vpop.f32.mrb[35].mxu1  ;;  %4179 = vmatmul.mubr.bf16.gmra.mrb[92].mxu0 %v3791_v36  ;;  %4340 = vmatmul.mubr.bf16.gmra.mrb[92].mxu1 %v3793_v37  ;;  %v3699_v60 = vmax.f32 %v5073_v42, 0.0  ;;  %v3701_v61 = vmax.f32 %v5137_v43, 0.0 }
 0x2d9   :  { %v5076_v54 = vadd.f32 %v2790_v52, %v7256_v58  ;;  %v5140_v55 = vadd.f32 %v3562_v53, %v7258_v59  ;;  %v3700_v0 = vmax.f32 %v5074_v46, 0.0  ;;  %v3702_v1 = vmax.f32 %v5138_v47, 0.0 }
 0x2da   :  { %v3703_v62 = vmax.f32 %v5075_v50, 0.0  ;;  %v3705_v63 = vmax.f32 %v5139_v51, 0.0 }
 0x2db   :  { %v3704_v2 = vmax.f32 %v5076_v54, 0.0  ;;  %v3706_v3 = vmax.f32 %v5140_v55, 0.0 }
 0x2dc   :  { %v3795_v4 = vpack.c.bf16 %v3703_v62, %v3699_v60  ;;  %v3797_v5 = vpack.c.bf16 %v3705_v63, %v3701_v61 }
 0x2dd   :  { %v3796_v6 = vpack.c.bf16 %v3704_v2, %v3700_v0  ;;  %v3798_v7 = vpack.c.bf16 %v3706_v3, %v3702_v1  ;;  %v2794_v8 = vpop.f32.mrb[36].mxu0  ;;  %v3566_v9 = vpop.f32.mrb[36].mxu1 }
 0x2de   :  { %v5077_v10 = vadd.f32 %v2794_v8, %v7252_v56  ;;  %v5141_v11 = vadd.f32 %v3566_v9, %v7254_v57  ;;  %v2796_v12 = vpop.f32.mrb[37].mxu0  ;;  %v3568_v13 = vpop.f32.mrb[37].mxu1 }
 0x2df   :  { %v5078_v14 = vadd.f32 %v2796_v12, %v7256_v58  ;;  %v5142_v15 = vadd.f32 %v3568_v13, %v7258_v59  ;;  %v2798_v16 = vpop.f32.mrb[38].mxu0  ;;  %v3570_v17 = vpop.f32.mrb[38].mxu1  ;;  %4186 = vmatprep.mubr.bf16.mxu0 %v3796_v6  ;;  %4347 = vmatprep.mubr.bf16.mxu1 %v3798_v7 }
 0x2e0   :  { %v5079_v18 = vadd.f32 %v2798_v16, %v7252_v56  ;;  %v5143_v19 = vadd.f32 %v3570_v17, %v7254_v57  ;;  %v2800_v20 = vpop.f32.mrb[39].mxu0  ;;  %v3572_v21 = vpop.f32.mrb[39].mxu1  ;;  %4187 = vmatmul.mubr.bf16.gmra.mrb[96].mxu0 %v3795_v4  ;;  %4348 = vmatmul.mubr.bf16.gmra.mrb[96].mxu1 %v3797_v5  ;;  %v3707_v24 = vmax.f32 %v5077_v10, 0.0  ;;  %v3709_v25 = vmax.f32 %v5141_v11, 0.0 }
 0x2e1   :  { %v5080_v22 = vadd.f32 %v2800_v20, %v7256_v58  ;;  %v5144_v23 = vadd.f32 %v3572_v21, %v7258_v59  ;;  %v3708_v28 = vmax.f32 %v5078_v14, 0.0  ;;  %v3710_v29 = vmax.f32 %v5142_v15, 0.0 }
 0x2e2   :  { %v3711_v26 = vmax.f32 %v5079_v18, 0.0  ;;  %v3713_v27 = vmax.f32 %v5143_v19, 0.0 }
 0x2e3   :  { %v3712_v30 = vmax.f32 %v5080_v22, 0.0  ;;  %v3714_v31 = vmax.f32 %v5144_v23, 0.0 }
 0x2e4   :  { %v3799_v32 = vpack.c.bf16 %v3711_v26, %v3707_v24  ;;  %v3801_v33 = vpack.c.bf16 %v3713_v27, %v3709_v25 }
 0x2e5   :  { %v3800_v34 = vpack.c.bf16 %v3712_v30, %v3708_v28  ;;  %v3802_v35 = vpack.c.bf16 %v3714_v31, %v3710_v29  ;;  %v2804_v36 = vpop.f32.mrb[40].mxu0  ;;  %v3576_v37 = vpop.f32.mrb[40].mxu1 }
 0x2e6   :  { %v5081_v38 = vadd.f32 %v2804_v36, %v7252_v56  ;;  %v5145_v39 = vadd.f32 %v3576_v37, %v7254_v57  ;;  %v2806_v40 = vpop.f32.mrb[41].mxu0  ;;  %v3578_v41 = vpop.f32.mrb[41].mxu1 }
 0x2e7   :  { %v5082_v42 = vadd.f32 %v2806_v40, %v7256_v58  ;;  %v5146_v43 = vadd.f32 %v3578_v41, %v7258_v59  ;;  %v2808_v44 = vpop.f32.mrb[42].mxu0  ;;  %v3580_v45 = vpop.f32.mrb[42].mxu1  ;;  %4194 = vmatprep.mubr.bf16.mxu0 %v3800_v34  ;;  %4355 = vmatprep.mubr.bf16.mxu1 %v3802_v35 }
 0x2e8   :  { %v5083_v46 = vadd.f32 %v2808_v44, %v7252_v56  ;;  %v5147_v47 = vadd.f32 %v3580_v45, %v7254_v57  ;;  %v2810_v48 = vpop.f32.mrb[43].mxu0  ;;  %v3582_v49 = vpop.f32.mrb[43].mxu1  ;;  %4195 = vmatmul.mubr.bf16.gmra.mrb[100].mxu0 %v3799_v32  ;;  %4356 = vmatmul.mubr.bf16.gmra.mrb[100].mxu1 %v3801_v33  ;;  %v3715_v52 = vmax.f32 %v5081_v38, 0.0  ;;  %v3717_v53 = vmax.f32 %v5145_v39, 0.0 }
 0x2e9   :  { %v5084_v50 = vadd.f32 %v2810_v48, %v7256_v58  ;;  %v5148_v51 = vadd.f32 %v3582_v49, %v7258_v59  ;;  %v3716_v60 = vmax.f32 %v5082_v42, 0.0  ;;  %v3718_v61 = vmax.f32 %v5146_v43, 0.0 }
 0x2ea   :  { %v3719_v54 = vmax.f32 %v5083_v46, 0.0  ;;  %v3721_v55 = vmax.f32 %v5147_v47, 0.0 }
 0x2eb   :  { %v3720_v62 = vmax.f32 %v5084_v50, 0.0  ;;  %v3722_v63 = vmax.f32 %v5148_v51, 0.0 }
 0x2ec   :  { %v3803_v0 = vpack.c.bf16 %v3719_v54, %v3715_v52  ;;  %v3805_v1 = vpack.c.bf16 %v3721_v55, %v3717_v53 }
 0x2ed   :  { %v3804_v2 = vpack.c.bf16 %v3720_v62, %v3716_v60  ;;  %v3806_v3 = vpack.c.bf16 %v3722_v63, %v3718_v61  ;;  %v2814_v4 = vpop.f32.mrb[44].mxu0  ;;  %v3586_v5 = vpop.f32.mrb[44].mxu1 }
 0x2ee   :  { %v5085_v6 = vadd.f32 %v2814_v4, %v7252_v56  ;;  %v5149_v7 = vadd.f32 %v3586_v5, %v7254_v57  ;;  %v2816_v8 = vpop.f32.mrb[45].mxu0  ;;  %v3588_v9 = vpop.f32.mrb[45].mxu1 }
 0x2ef   :  { %v5086_v10 = vadd.f32 %v2816_v8, %v7256_v58  ;;  %v5150_v11 = vadd.f32 %v3588_v9, %v7258_v59  ;;  %v2818_v12 = vpop.f32.mrb[46].mxu0  ;;  %v3590_v13 = vpop.f32.mrb[46].mxu1  ;;  %4202 = vmatprep.mubr.bf16.mxu0 %v3804_v2  ;;  %4363 = vmatprep.mubr.bf16.mxu1 %v3806_v3 }
 0x2f0   :  { %v5087_v14 = vadd.f32 %v2818_v12, %v7252_v56  ;;  %v5151_v15 = vadd.f32 %v3590_v13, %v7254_v57  ;;  %v2820_v16 = vpop.f32.mrb[47].mxu0  ;;  %v3592_v17 = vpop.f32.mrb[47].mxu1  ;;  %4203 = vmatmul.mubr.bf16.gmra.mrb[104].mxu0 %v3803_v0  ;;  %4364 = vmatmul.mubr.bf16.gmra.mrb[104].mxu1 %v3805_v1  ;;  %v3723_v20 = vmax.f32 %v5085_v6, 0.0  ;;  %v3725_v21 = vmax.f32 %v5149_v7, 0.0 }
 0x2f1   :  { %v5088_v18 = vadd.f32 %v2820_v16, %v7256_v58  ;;  %v5152_v19 = vadd.f32 %v3592_v17, %v7258_v59  ;;  %v3724_v24 = vmax.f32 %v5086_v10, 0.0  ;;  %v3726_v25 = vmax.f32 %v5150_v11, 0.0 }
 0x2f2   :  { %v3727_v22 = vmax.f32 %v5087_v14, 0.0  ;;  %v3729_v23 = vmax.f32 %v5151_v15, 0.0 }
 0x2f3   :  { %v3728_v26 = vmax.f32 %v5088_v18, 0.0  ;;  %v3730_v27 = vmax.f32 %v5152_v19, 0.0 }
 0x2f4   :  { %v3807_v28 = vpack.c.bf16 %v3727_v22, %v3723_v20  ;;  %v3809_v29 = vpack.c.bf16 %v3729_v23, %v3725_v21 }
 0x2f5   :  { %v3808_v30 = vpack.c.bf16 %v3728_v26, %v3724_v24  ;;  %v3810_v31 = vpack.c.bf16 %v3730_v27, %v3726_v25  ;;  %v2824_v32 = vpop.f32.mrb[48].mxu0  ;;  %v3596_v33 = vpop.f32.mrb[48].mxu1 }
 0x2f6   :  { %v5089_v34 = vadd.f32 %v2824_v32, %v7252_v56  ;;  %v5153_v35 = vadd.f32 %v3596_v33, %v7254_v57  ;;  %v2826_v36 = vpop.f32.mrb[49].mxu0  ;;  %v3598_v37 = vpop.f32.mrb[49].mxu1 }
 0x2f7   :  { %v5090_v38 = vadd.f32 %v2826_v36, %v7256_v58  ;;  %v5154_v39 = vadd.f32 %v3598_v37, %v7258_v59  ;;  %v2828_v40 = vpop.f32.mrb[50].mxu0  ;;  %v3600_v41 = vpop.f32.mrb[50].mxu1  ;;  %4210 = vmatprep.mubr.bf16.mxu0 %v3808_v30  ;;  %4371 = vmatprep.mubr.bf16.mxu1 %v3810_v31 }
 0x2f8   :  { %v5091_v42 = vadd.f32 %v2828_v40, %v7252_v56  ;;  %v5155_v43 = vadd.f32 %v3600_v41, %v7254_v57  ;;  %v2830_v44 = vpop.f32.mrb[51].mxu0  ;;  %v3602_v45 = vpop.f32.mrb[51].mxu1  ;;  %4211 = vmatmul.mubr.bf16.gmra.mrb[108].mxu0 %v3807_v28  ;;  %4372 = vmatmul.mubr.bf16.gmra.mrb[108].mxu1 %v3809_v29  ;;  %v3731_v48 = vmax.f32 %v5089_v34, 0.0  ;;  %v3733_v49 = vmax.f32 %v5153_v35, 0.0 }
 0x2f9   :  { %v5092_v46 = vadd.f32 %v2830_v44, %v7256_v58  ;;  %v5156_v47 = vadd.f32 %v3602_v45, %v7258_v59  ;;  %v3732_v52 = vmax.f32 %v5090_v38, 0.0  ;;  %v3734_v53 = vmax.f32 %v5154_v39, 0.0 }
 0x2fa   :  { %v3735_v50 = vmax.f32 %v5091_v42, 0.0  ;;  %v3737_v51 = vmax.f32 %v5155_v43, 0.0 }
 0x2fb   :  { %v3736_v54 = vmax.f32 %v5092_v46, 0.0  ;;  %v3738_v55 = vmax.f32 %v5156_v47, 0.0 }
 0x2fc   :  { %v3811_v60 = vpack.c.bf16 %v3735_v50, %v3731_v48  ;;  %v3813_v61 = vpack.c.bf16 %v3737_v51, %v3733_v49 }
 0x2fd   :  { %v3812_v62 = vpack.c.bf16 %v3736_v54, %v3732_v52  ;;  %v3814_v63 = vpack.c.bf16 %v3738_v55, %v3734_v53  ;;  %v2834_v0 = vpop.f32.mrb[52].mxu0  ;;  %v3606_v1 = vpop.f32.mrb[52].mxu1 }
 0x2fe   :  { %v5093_v2 = vadd.f32 %v2834_v0, %v7252_v56  ;;  %v5157_v3 = vadd.f32 %v3606_v1, %v7254_v57  ;;  %v2836_v4 = vpop.f32.mrb[53].mxu0  ;;  %v3608_v5 = vpop.f32.mrb[53].mxu1 }
 0x2ff   :  { %v5094_v6 = vadd.f32 %v2836_v4, %v7256_v58  ;;  %v5158_v7 = vadd.f32 %v3608_v5, %v7258_v59  ;;  %v2838_v8 = vpop.f32.mrb[54].mxu0  ;;  %v3610_v9 = vpop.f32.mrb[54].mxu1  ;;  %4218 = vmatprep.mubr.bf16.mxu0 %v3812_v62  ;;  %4379 = vmatprep.mubr.bf16.mxu1 %v3814_v63 }
 0x300   :  { %v5095_v10 = vadd.f32 %v2838_v8, %v7252_v56  ;;  %v5159_v11 = vadd.f32 %v3610_v9, %v7254_v57  ;;  %v2840_v12 = vpop.f32.mrb[55].mxu0  ;;  %v3612_v13 = vpop.f32.mrb[55].mxu1  ;;  %4219 = vmatmul.mubr.bf16.gmra.mrb[112].mxu0 %v3811_v60  ;;  %4380 = vmatmul.mubr.bf16.gmra.mrb[112].mxu1 %v3813_v61  ;;  %v3739_v16 = vmax.f32 %v5093_v2, 0.0  ;;  %v3741_v17 = vmax.f32 %v5157_v3, 0.0 }
 0x301   :  { %v5096_v14 = vadd.f32 %v2840_v12, %v7256_v58  ;;  %v5160_v15 = vadd.f32 %v3612_v13, %v7258_v59  ;;  %v3740_v20 = vmax.f32 %v5094_v6, 0.0  ;;  %v3742_v21 = vmax.f32 %v5158_v7, 0.0 }
 0x302   :  { %v3743_v18 = vmax.f32 %v5095_v10, 0.0  ;;  %v3745_v19 = vmax.f32 %v5159_v11, 0.0 }
 0x303   :  { %v3744_v22 = vmax.f32 %v5096_v14, 0.0  ;;  %v3746_v23 = vmax.f32 %v5160_v15, 0.0 }
 0x304   :  { %v3815_v24 = vpack.c.bf16 %v3743_v18, %v3739_v16  ;;  %v3817_v25 = vpack.c.bf16 %v3745_v19, %v3741_v17 }
 0x305   :  { %v3816_v26 = vpack.c.bf16 %v3744_v22, %v3740_v20  ;;  %v3818_v27 = vpack.c.bf16 %v3746_v23, %v3742_v21  ;;  %v2844_v28 = vpop.f32.mrb[56].mxu0  ;;  %v3616_v29 = vpop.f32.mrb[56].mxu1 }
 0x306   :  { %v5097_v30 = vadd.f32 %v2844_v28, %v7252_v56  ;;  %v5161_v31 = vadd.f32 %v3616_v29, %v7254_v57  ;;  %v2846_v32 = vpop.f32.mrb[57].mxu0  ;;  %v3618_v33 = vpop.f32.mrb[57].mxu1 }
 0x307   :  { %v5098_v34 = vadd.f32 %v2846_v32, %v7256_v58  ;;  %v5162_v35 = vadd.f32 %v3618_v33, %v7258_v59  ;;  %v2848_v36 = vpop.f32.mrb[58].mxu0  ;;  %v3620_v37 = vpop.f32.mrb[58].mxu1  ;;  %4226 = vmatprep.mubr.bf16.mxu0 %v3816_v26  ;;  %4387 = vmatprep.mubr.bf16.mxu1 %v3818_v27 }
 0x308   :  { %v5099_v38 = vadd.f32 %v2848_v36, %v7252_v56  ;;  %v5163_v39 = vadd.f32 %v3620_v37, %v7254_v57  ;;  %v2850_v40 = vpop.f32.mrb[59].mxu0  ;;  %v3622_v41 = vpop.f32.mrb[59].mxu1  ;;  %4227 = vmatmul.mubr.bf16.gmra.mrb[116].mxu0 %v3815_v24  ;;  %4388 = vmatmul.mubr.bf16.gmra.mrb[116].mxu1 %v3817_v25  ;;  %v3747_v44 = vmax.f32 %v5097_v30, 0.0  ;;  %v3749_v45 = vmax.f32 %v5161_v31, 0.0 }
 0x309   :  { %v5100_v42 = vadd.f32 %v2850_v40, %v7256_v58  ;;  %v5164_v43 = vadd.f32 %v3622_v41, %v7258_v59  ;;  %v3748_v48 = vmax.f32 %v5098_v34, 0.0  ;;  %v3750_v49 = vmax.f32 %v5162_v35, 0.0 }
 0x30a   :  { %v3751_v46 = vmax.f32 %v5099_v38, 0.0  ;;  %v3753_v47 = vmax.f32 %v5163_v39, 0.0 }
 0x30b   :  { %v3752_v50 = vmax.f32 %v5100_v42, 0.0  ;;  %v3754_v51 = vmax.f32 %v5164_v43, 0.0 }
 0x30c   :  { %v3819_v52 = vpack.c.bf16 %v3751_v46, %v3747_v44  ;;  %v3821_v53 = vpack.c.bf16 %v3753_v47, %v3749_v45 }
 0x30d   :  { %v3820_v54 = vpack.c.bf16 %v3752_v50, %v3748_v48  ;;  %v3822_v55 = vpack.c.bf16 %v3754_v51, %v3750_v49  ;;  %v2854_v60 = vpop.f32.mrb[60].mxu0  ;;  %v3626_v61 = vpop.f32.mrb[60].mxu1 }
 0x30e   :  { %v5101_v62 = vadd.f32 %v2854_v60, %v7252_v56  ;;  %v5165_v63 = vadd.f32 %v3626_v61, %v7254_v57  ;;  %v2856_v0 = vpop.f32.mrb[61].mxu0  ;;  %v3628_v1 = vpop.f32.mrb[61].mxu1 }
 0x30f   :  { %v5102_v2 = vadd.f32 %v2856_v0, %v7256_v58  ;;  %v5166_v3 = vadd.f32 %v3628_v1, %v7258_v59  ;;  %v2858_v4 = vpop.f32.mrb[62].mxu0  ;;  %v3630_v5 = vpop.f32.mrb[62].mxu1  ;;  %4234 = vmatprep.mubr.bf16.mxu0 %v3820_v54  ;;  %4395 = vmatprep.mubr.bf16.mxu1 %v3822_v55 }
 0x310   :  { %v5103_v6 = vadd.f32 %v2858_v4, %v7252_v56  ;;  %v5167_v7 = vadd.f32 %v3630_v5, %v7254_v57  ;;  %v2860_v8 = vpop.f32.mrb[63].mxu0  ;;  %v3632_v9 = vpop.f32.mrb[63].mxu1  ;;  %4235 = vmatmul.mubr.bf16.gmra.mrb[120].mxu0 %v3819_v52  ;;  %4396 = vmatmul.mubr.bf16.gmra.mrb[120].mxu1 %v3821_v53  ;;  %v3755_v12 = vmax.f32 %v5101_v62, 0.0  ;;  %v3757_v13 = vmax.f32 %v5165_v63, 0.0 }
 0x311   :  { %v5104_v10 = vadd.f32 %v2860_v8, %v7256_v58  ;;  %v5168_v11 = vadd.f32 %v3632_v9, %v7258_v59  ;;  %v3756_v16 = vmax.f32 %v5102_v2, 0.0  ;;  %v3758_v17 = vmax.f32 %v5166_v3, 0.0  ;;  %v7391_v59 = vld [vmem:[%s7525_s4] ss:$0 sm:$0xff] }
 0x312   :  { %v3759_v14 = vmax.f32 %v5103_v6, 0.0  ;;  %v3761_v15 = vmax.f32 %v5167_v7, 0.0 }
 0x313   :  { %v3760_v18 = vmax.f32 %v5104_v10, 0.0  ;;  %v3762_v19 = vmax.f32 %v5168_v11, 0.0 }
 0x314   :  { %v3823_v20 = vpack.c.bf16 %v3759_v14, %v3755_v12  ;;  %v3825_v56 = vpack.c.bf16 %v3761_v15, %v3757_v13 }
 0x315   :  { %v3824_v21 = vpack.c.bf16 %v3760_v18, %v3756_v16  ;;  %v3826_v57 = vpack.c.bf16 %v3762_v19, %v3758_v17 }
 0x317   :  { %4242 = vmatprep.mubr.bf16.mxu0 %v3824_v21  ;;  %4403 = vmatprep.mubr.bf16.mxu1 %v3826_v57 }
 0x318   :  { %4243 = vmatmul.mubr.bf16.gmra.mrb[124].mxu0 %v3823_v20  ;;  %4404 = vmatmul.mubr.bf16.gmra.mrb[124].mxu1 %v3825_v56 }
 0x373   :  { %v4833_v22 = vpop.f32.mrb[64].mxu0  ;;  %v4945_v58 = vpop.f32.mrb[64].mxu1 }
 0x374   :  { %v4834_v23 = vpop.f32.mrb[65].mxu0  ;;  %v4946_v24 = vpop.f32.mrb[65].mxu1 }
 0x375   :  { %v4835_v25 = vadd.f32 %v4834_v23, %v4833_v22  ;;  %v4947_v26 = vadd.f32 %v4946_v24, %v4945_v58  ;;  %v4836_v27 = vpop.f32.mrb[66].mxu0  ;;  %v4948_v28 = vpop.f32.mrb[66].mxu1 }
 0x376   :  { %v4837_v29 = vpop.f32.mrb[67].mxu0  ;;  %v4949_v30 = vpop.f32.mrb[67].mxu1 }
 0x377   :  { %v4125_v31 = vadd.f32 %v4835_v25, %v7391_v59  ;;  %v4838_v32 = vadd.f32 %v4837_v29, %v4836_v27  ;;  %v4950_v33 = vadd.f32 %v4949_v30, %v4948_v28 }
 0x379   :  { %v4286_v34 = vadd.f32 %v4947_v26, %v4125_v31  ;;  %v4128_v35 = vadd.f32 %v4838_v32, %v7391_v59 }
 0x37b   :  { %4412 = vst [vmem:[%s7526_s5] sm:$0xff] %v4286_v34  ;;  %v4289_v36 = vadd.f32 %v4950_v33, %v4128_v35  ;;  %v4839_v37 = vpop.f32.mrb[68].mxu0  ;;  %v4951_v38 = vpop.f32.mrb[68].mxu1 }
 0x37c   :  { %v4840_v39 = vpop.f32.mrb[69].mxu0  ;;  %v4952_v40 = vpop.f32.mrb[69].mxu1 }
 0x37d   :  { %4413 = vst [vmem:[%s7526_s5 + $0x8] sm:$0xff] %v4289_v36  ;;  %v4841_v41 = vadd.f32 %v4840_v39, %v4839_v37  ;;  %v4953_v42 = vadd.f32 %v4952_v40, %v4951_v38  ;;  %v4842_v43 = vpop.f32.mrb[70].mxu0  ;;  %v4954_v44 = vpop.f32.mrb[70].mxu1 }
 0x37e   :  { %v4843_v45 = vpop.f32.mrb[71].mxu0  ;;  %v4955_v46 = vpop.f32.mrb[71].mxu1 }
 0x37f   :  { %v4133_v47 = vadd.f32 %v4841_v41, %v7391_v59  ;;  %v4844_v48 = vadd.f32 %v4843_v45, %v4842_v43  ;;  %v4956_v49 = vadd.f32 %v4955_v46, %v4954_v44 }
 0x381   :  { %v4294_v50 = vadd.f32 %v4953_v42, %v4133_v47  ;;  %v4136_v51 = vadd.f32 %v4844_v48, %v7391_v59 }
 0x383   :  { %4414 = vst [vmem:[%s7526_s5 + $0x10] sm:$0xff] %v4294_v50  ;;  %v4297_v52 = vadd.f32 %v4956_v49, %v4136_v51  ;;  %v4845_v53 = vpop.f32.mrb[72].mxu0  ;;  %v4957_v54 = vpop.f32.mrb[72].mxu1 }
 0x384   :  { %v4846_v55 = vpop.f32.mrb[73].mxu0  ;;  %v4958_v60 = vpop.f32.mrb[73].mxu1 }
 0x385   :  { %4415 = vst [vmem:[%s7526_s5 + $0x18] sm:$0xff] %v4297_v52  ;;  %v4847_v61 = vadd.f32 %v4846_v55, %v4845_v53  ;;  %v4959_v62 = vadd.f32 %v4958_v60, %v4957_v54  ;;  %v4848_v63 = vpop.f32.mrb[74].mxu0  ;;  %v4960_v0 = vpop.f32.mrb[74].mxu1 }
 0x386   :  { %v4849_v1 = vpop.f32.mrb[75].mxu0  ;;  %v4961_v2 = vpop.f32.mrb[75].mxu1 }
 0x387   :  { %v4141_v3 = vadd.f32 %v4847_v61, %v7391_v59  ;;  %v4850_v4 = vadd.f32 %v4849_v1, %v4848_v63  ;;  %v4962_v5 = vadd.f32 %v4961_v2, %v4960_v0 }
 0x389   :  { %v4302_v6 = vadd.f32 %v4959_v62, %v4141_v3  ;;  %v4144_v7 = vadd.f32 %v4850_v4, %v7391_v59 }
 0x38b   :  { %4416 = vst [vmem:[%s7526_s5 + $0x20] sm:$0xff] %v4302_v6  ;;  %v4305_v8 = vadd.f32 %v4962_v5, %v4144_v7  ;;  %v4851_v9 = vpop.f32.mrb[76].mxu0  ;;  %v4963_v10 = vpop.f32.mrb[76].mxu1 }
 0x38c   :  { %v4852_v11 = vpop.f32.mrb[77].mxu0  ;;  %v4964_v12 = vpop.f32.mrb[77].mxu1 }
 0x38d   :  { %4417 = vst [vmem:[%s7526_s5 + $0x28] sm:$0xff] %v4305_v8  ;;  %v4853_v13 = vadd.f32 %v4852_v11, %v4851_v9  ;;  %v4965_v14 = vadd.f32 %v4964_v12, %v4963_v10  ;;  %v4854_v15 = vpop.f32.mrb[78].mxu0  ;;  %v4966_v16 = vpop.f32.mrb[78].mxu1 }
 0x38e   :  { %v4855_v17 = vpop.f32.mrb[79].mxu0  ;;  %v4967_v18 = vpop.f32.mrb[79].mxu1 }
 0x38f   :  { %v4149_v19 = vadd.f32 %v4853_v13, %v7391_v59  ;;  %v4856_v20 = vadd.f32 %v4855_v17, %v4854_v15  ;;  %v4968_v56 = vadd.f32 %v4967_v18, %v4966_v16 }
 0x391   :  { %v4310_v21 = vadd.f32 %v4965_v14, %v4149_v19  ;;  %v4152_v57 = vadd.f32 %v4856_v20, %v7391_v59 }
 0x393   :  { %4418 = vst [vmem:[%s7526_s5 + $0x30] sm:$0xff] %v4310_v21  ;;  %v4313_v22 = vadd.f32 %v4968_v56, %v4152_v57  ;;  %v4857_v58 = vpop.f32.mrb[80].mxu0  ;;  %v4969_v23 = vpop.f32.mrb[80].mxu1 }
 0x394   :  { %v4858_v24 = vpop.f32.mrb[81].mxu0  ;;  %v4970_v25 = vpop.f32.mrb[81].mxu1 }
 0x395   :  { %4419 = vst [vmem:[%s7526_s5 + $0x38] sm:$0xff] %v4313_v22  ;;  %v4859_v26 = vadd.f32 %v4858_v24, %v4857_v58  ;;  %v4971_v27 = vadd.f32 %v4970_v25, %v4969_v23  ;;  %v4860_v28 = vpop.f32.mrb[82].mxu0  ;;  %v4972_v29 = vpop.f32.mrb[82].mxu1 }
 0x396   :  { %v4861_v30 = vpop.f32.mrb[83].mxu0  ;;  %v4973_v31 = vpop.f32.mrb[83].mxu1 }
 0x397   :  { %v4157_v32 = vadd.f32 %v4859_v26, %v7391_v59  ;;  %v4862_v33 = vadd.f32 %v4861_v30, %v4860_v28  ;;  %v4974_v34 = vadd.f32 %v4973_v31, %v4972_v29 }
 0x399   :  { %v4318_v35 = vadd.f32 %v4971_v27, %v4157_v32  ;;  %v4160_v36 = vadd.f32 %v4862_v33, %v7391_v59 }
 0x39b   :  { %4420 = vst [vmem:[%s7526_s5 + $0x40] sm:$0xff] %v4318_v35  ;;  %v4321_v37 = vadd.f32 %v4974_v34, %v4160_v36  ;;  %v4863_v38 = vpop.f32.mrb[84].mxu0  ;;  %v4975_v39 = vpop.f32.mrb[84].mxu1 }
 0x39c   :  { %v4864_v40 = vpop.f32.mrb[85].mxu0  ;;  %v4976_v41 = vpop.f32.mrb[85].mxu1 }
 0x39d   :  { %4421 = vst [vmem:[%s7526_s5 + $0x48] sm:$0xff] %v4321_v37  ;;  %v4865_v42 = vadd.f32 %v4864_v40, %v4863_v38  ;;  %v4977_v43 = vadd.f32 %v4976_v41, %v4975_v39  ;;  %v4866_v44 = vpop.f32.mrb[86].mxu0  ;;  %v4978_v45 = vpop.f32.mrb[86].mxu1 }
 0x39e   :  { %v4867_v46 = vpop.f32.mrb[87].mxu0  ;;  %v4979_v47 = vpop.f32.mrb[87].mxu1 }
 0x39f   :  { %v4165_v48 = vadd.f32 %v4865_v42, %v7391_v59  ;;  %v4868_v49 = vadd.f32 %v4867_v46, %v4866_v44  ;;  %v4980_v50 = vadd.f32 %v4979_v47, %v4978_v45 }
 0x3a1   :  { %v4326_v51 = vadd.f32 %v4977_v43, %v4165_v48  ;;  %v4168_v52 = vadd.f32 %v4868_v49, %v7391_v59 }
 0x3a3   :  { %4422 = vst [vmem:[%s7526_s5 + $0x50] sm:$0xff] %v4326_v51  ;;  %v4329_v53 = vadd.f32 %v4980_v50, %v4168_v52  ;;  %v4869_v54 = vpop.f32.mrb[88].mxu0  ;;  %v4981_v55 = vpop.f32.mrb[88].mxu1 }
 0x3a4   :  { %v4870_v60 = vpop.f32.mrb[89].mxu0  ;;  %v4982_v61 = vpop.f32.mrb[89].mxu1 }
 0x3a5   :  { %4423 = vst [vmem:[%s7526_s5 + $0x58] sm:$0xff] %v4329_v53  ;;  %v4871_v62 = vadd.f32 %v4870_v60, %v4869_v54  ;;  %v4983_v63 = vadd.f32 %v4982_v61, %v4981_v55  ;;  %v4872_v0 = vpop.f32.mrb[90].mxu0  ;;  %v4984_v1 = vpop.f32.mrb[90].mxu1 }
 0x3a6   :  { %v4873_v2 = vpop.f32.mrb[91].mxu0  ;;  %v4985_v3 = vpop.f32.mrb[91].mxu1 }
 0x3a7   :  { %v4173_v4 = vadd.f32 %v4871_v62, %v7391_v59  ;;  %v4874_v5 = vadd.f32 %v4873_v2, %v4872_v0  ;;  %v4986_v6 = vadd.f32 %v4985_v3, %v4984_v1 }
 0x3a9   :  { %v4334_v7 = vadd.f32 %v4983_v63, %v4173_v4  ;;  %v4176_v8 = vadd.f32 %v4874_v5, %v7391_v59 }
 0x3ab   :  { %4424 = vst [vmem:[%s7526_s5 + $0x60] sm:$0xff] %v4334_v7  ;;  %v4337_v9 = vadd.f32 %v4986_v6, %v4176_v8  ;;  %v4875_v10 = vpop.f32.mrb[92].mxu0  ;;  %v4987_v11 = vpop.f32.mrb[92].mxu1 }
 0x3ac   :  { %v4876_v12 = vpop.f32.mrb[93].mxu0  ;;  %v4988_v13 = vpop.f32.mrb[93].mxu1 }
 0x3ad   :  { %4425 = vst [vmem:[%s7526_s5 + $0x68] sm:$0xff] %v4337_v9  ;;  %v4877_v14 = vadd.f32 %v4876_v12, %v4875_v10  ;;  %v4989_v15 = vadd.f32 %v4988_v13, %v4987_v11  ;;  %v4878_v16 = vpop.f32.mrb[94].mxu0  ;;  %v4990_v17 = vpop.f32.mrb[94].mxu1 }
 0x3ae   :  { %v4879_v18 = vpop.f32.mrb[95].mxu0  ;;  %v4991_v19 = vpop.f32.mrb[95].mxu1 }
 0x3af   :  { %v4181_v20 = vadd.f32 %v4877_v14, %v7391_v59  ;;  %v4880_v56 = vadd.f32 %v4879_v18, %v4878_v16  ;;  %v4992_v21 = vadd.f32 %v4991_v19, %v4990_v17 }
 0x3b1   :  { %v4342_v57 = vadd.f32 %v4989_v15, %v4181_v20  ;;  %v4184_v22 = vadd.f32 %v4880_v56, %v7391_v59 }
 0x3b3   :  { %4426 = vst [vmem:[%s7526_s5 + $0x70] sm:$0xff] %v4342_v57  ;;  %v4345_v58 = vadd.f32 %v4992_v21, %v4184_v22  ;;  %v4881_v23 = vpop.f32.mrb[96].mxu0  ;;  %v4993_v24 = vpop.f32.mrb[96].mxu1 }
 0x3b4   :  { %v4882_v25 = vpop.f32.mrb[97].mxu0  ;;  %v4994_v26 = vpop.f32.mrb[97].mxu1 }
 0x3b5   :  { %4427 = vst [vmem:[%s7526_s5 + $0x78] sm:$0xff] %v4345_v58  ;;  %v4883_v27 = vadd.f32 %v4882_v25, %v4881_v23  ;;  %v4995_v28 = vadd.f32 %v4994_v26, %v4993_v24  ;;  %v4884_v29 = vpop.f32.mrb[98].mxu0  ;;  %v4996_v30 = vpop.f32.mrb[98].mxu1 }
 0x3b6   :  { %v4885_v31 = vpop.f32.mrb[99].mxu0  ;;  %v4997_v32 = vpop.f32.mrb[99].mxu1 }
 0x3b7   :  { %v4189_v33 = vadd.f32 %v4883_v27, %v7391_v59  ;;  %v4886_v34 = vadd.f32 %v4885_v31, %v4884_v29  ;;  %v4998_v35 = vadd.f32 %v4997_v32, %v4996_v30 }
 0x3b9   :  { %v4350_v36 = vadd.f32 %v4995_v28, %v4189_v33  ;;  %v4192_v37 = vadd.f32 %v4886_v34, %v7391_v59 }
 0x3bb   :  { %4428 = vst [vmem:[%s7526_s5 + $0x80] sm:$0xff] %v4350_v36  ;;  %v4353_v38 = vadd.f32 %v4998_v35, %v4192_v37  ;;  %v4887_v39 = vpop.f32.mrb[100].mxu0  ;;  %v4999_v40 = vpop.f32.mrb[100].mxu1 }
 0x3bc   :  { %v4888_v41 = vpop.f32.mrb[101].mxu0  ;;  %v5000_v42 = vpop.f32.mrb[101].mxu1 }
 0x3bd   :  { %4429 = vst [vmem:[%s7526_s5 + $0x88] sm:$0xff] %v4353_v38  ;;  %v4889_v43 = vadd.f32 %v4888_v41, %v4887_v39  ;;  %v5001_v44 = vadd.f32 %v5000_v42, %v4999_v40  ;;  %v4890_v45 = vpop.f32.mrb[102].mxu0  ;;  %v5002_v46 = vpop.f32.mrb[102].mxu1 }
 0x3be   :  { %v4891_v47 = vpop.f32.mrb[103].mxu0  ;;  %v5003_v48 = vpop.f32.mrb[103].mxu1 }
 0x3bf   :  { %v4197_v49 = vadd.f32 %v4889_v43, %v7391_v59  ;;  %v4892_v50 = vadd.f32 %v4891_v47, %v4890_v45  ;;  %v5004_v51 = vadd.f32 %v5003_v48, %v5002_v46 }
 0x3c1   :  { %v4358_v52 = vadd.f32 %v5001_v44, %v4197_v49  ;;  %v4200_v53 = vadd.f32 %v4892_v50, %v7391_v59 }
 0x3c3   :  { %4430 = vst [vmem:[%s7526_s5 + $0x90] sm:$0xff] %v4358_v52  ;;  %v4361_v54 = vadd.f32 %v5004_v51, %v4200_v53  ;;  %v4893_v55 = vpop.f32.mrb[104].mxu0  ;;  %v5005_v60 = vpop.f32.mrb[104].mxu1 }
 0x3c4   :  { %v4894_v61 = vpop.f32.mrb[105].mxu0  ;;  %v5006_v62 = vpop.f32.mrb[105].mxu1 }
 0x3c5   :  { %4431 = vst [vmem:[%s7526_s5 + $0x98] sm:$0xff] %v4361_v54  ;;  %v4895_v63 = vadd.f32 %v4894_v61, %v4893_v55  ;;  %v5007_v0 = vadd.f32 %v5006_v62, %v5005_v60  ;;  %v4896_v1 = vpop.f32.mrb[106].mxu0  ;;  %v5008_v2 = vpop.f32.mrb[106].mxu1 }
 0x3c6   :  { %v4897_v3 = vpop.f32.mrb[107].mxu0  ;;  %v5009_v4 = vpop.f32.mrb[107].mxu1 }
 0x3c7   :  { %v4205_v5 = vadd.f32 %v4895_v63, %v7391_v59  ;;  %v4898_v6 = vadd.f32 %v4897_v3, %v4896_v1  ;;  %v5010_v7 = vadd.f32 %v5009_v4, %v5008_v2 }
 0x3c9   :  { %v4366_v8 = vadd.f32 %v5007_v0, %v4205_v5  ;;  %v4208_v9 = vadd.f32 %v4898_v6, %v7391_v59 }
 0x3cb   :  { %4432 = vst [vmem:[%s7526_s5 + $0xa0] sm:$0xff] %v4366_v8  ;;  %v4369_v10 = vadd.f32 %v5010_v7, %v4208_v9  ;;  %v4899_v11 = vpop.f32.mrb[108].mxu0  ;;  %v5011_v12 = vpop.f32.mrb[108].mxu1 }
 0x3cc   :  { %v4900_v13 = vpop.f32.mrb[109].mxu0  ;;  %v5012_v14 = vpop.f32.mrb[109].mxu1 }
 0x3cd   :  { %4433 = vst [vmem:[%s7526_s5 + $0xa8] sm:$0xff] %v4369_v10  ;;  %v4901_v15 = vadd.f32 %v4900_v13, %v4899_v11  ;;  %v5013_v16 = vadd.f32 %v5012_v14, %v5011_v12  ;;  %v4902_v17 = vpop.f32.mrb[110].mxu0  ;;  %v5014_v18 = vpop.f32.mrb[110].mxu1 }
 0x3ce   :  { %v4903_v19 = vpop.f32.mrb[111].mxu0  ;;  %v5015_v20 = vpop.f32.mrb[111].mxu1 }
 0x3cf   :  { %v4213_v56 = vadd.f32 %v4901_v15, %v7391_v59  ;;  %v4904_v21 = vadd.f32 %v4903_v19, %v4902_v17  ;;  %v5016_v57 = vadd.f32 %v5015_v20, %v5014_v18 }
 0x3d1   :  { %v4374_v22 = vadd.f32 %v5013_v16, %v4213_v56  ;;  %v4216_v58 = vadd.f32 %v4904_v21, %v7391_v59 }
 0x3d3   :  { %4434 = vst [vmem:[%s7526_s5 + $0xb0] sm:$0xff] %v4374_v22  ;;  %v4377_v23 = vadd.f32 %v5016_v57, %v4216_v58  ;;  %v4905_v24 = vpop.f32.mrb[112].mxu0  ;;  %v5017_v25 = vpop.f32.mrb[112].mxu1 }
 0x3d4   :  { %v4906_v26 = vpop.f32.mrb[113].mxu0  ;;  %v5018_v27 = vpop.f32.mrb[113].mxu1 }
 0x3d5   :  { %4435 = vst [vmem:[%s7526_s5 + $0xb8] sm:$0xff] %v4377_v23  ;;  %v4907_v28 = vadd.f32 %v4906_v26, %v4905_v24  ;;  %v5019_v29 = vadd.f32 %v5018_v27, %v5017_v25  ;;  %v4908_v30 = vpop.f32.mrb[114].mxu0  ;;  %v5020_v31 = vpop.f32.mrb[114].mxu1 }
 0x3d6   :  { %v4909_v32 = vpop.f32.mrb[115].mxu0  ;;  %v5021_v33 = vpop.f32.mrb[115].mxu1 }
 0x3d7   :  { %v4221_v34 = vadd.f32 %v4907_v28, %v7391_v59  ;;  %v4910_v35 = vadd.f32 %v4909_v32, %v4908_v30  ;;  %v5022_v36 = vadd.f32 %v5021_v33, %v5020_v31 }
 0x3d9   :  { %v4382_v37 = vadd.f32 %v5019_v29, %v4221_v34  ;;  %v4224_v38 = vadd.f32 %v4910_v35, %v7391_v59 }
 0x3db   :  { %4436 = vst [vmem:[%s7526_s5 + $0xc0] sm:$0xff] %v4382_v37  ;;  %v4385_v39 = vadd.f32 %v5022_v36, %v4224_v38  ;;  %v4911_v40 = vpop.f32.mrb[116].mxu0  ;;  %v5023_v41 = vpop.f32.mrb[116].mxu1 }
 0x3dc   :  { %v4912_v42 = vpop.f32.mrb[117].mxu0  ;;  %v5024_v43 = vpop.f32.mrb[117].mxu1 }
 0x3dd   :  { %4437 = vst [vmem:[%s7526_s5 + $0xc8] sm:$0xff] %v4385_v39  ;;  %v4913_v44 = vadd.f32 %v4912_v42, %v4911_v40  ;;  %v5025_v45 = vadd.f32 %v5024_v43, %v5023_v41  ;;  %v4914_v46 = vpop.f32.mrb[118].mxu0  ;;  %v5026_v47 = vpop.f32.mrb[118].mxu1 }
 0x3de   :  { %v4915_v48 = vpop.f32.mrb[119].mxu0  ;;  %v5027_v49 = vpop.f32.mrb[119].mxu1 }
 0x3df   :  { %v4229_v50 = vadd.f32 %v4913_v44, %v7391_v59  ;;  %v4916_v51 = vadd.f32 %v4915_v48, %v4914_v46  ;;  %v5028_v52 = vadd.f32 %v5027_v49, %v5026_v47 }
 0x3e1   :  { %v4390_v53 = vadd.f32 %v5025_v45, %v4229_v50  ;;  %v4232_v54 = vadd.f32 %v4916_v51, %v7391_v59 }
 0x3e3   :  { %4438 = vst [vmem:[%s7526_s5 + $0xd0] sm:$0xff] %v4390_v53  ;;  %v4393_v55 = vadd.f32 %v5028_v52, %v4232_v54  ;;  %v4917_v60 = vpop.f32.mrb[120].mxu0  ;;  %v5029_v61 = vpop.f32.mrb[120].mxu1 }
 0x3e4   :  { %v4918_v62 = vpop.f32.mrb[121].mxu0  ;;  %v5030_v63 = vpop.f32.mrb[121].mxu1 }
 0x3e5   :  { %4439 = vst [vmem:[%s7526_s5 + $0xd8] sm:$0xff] %v4393_v55  ;;  %v4919_v0 = vadd.f32 %v4918_v62, %v4917_v60  ;;  %v5031_v1 = vadd.f32 %v5030_v63, %v5029_v61  ;;  %v4920_v2 = vpop.f32.mrb[122].mxu0  ;;  %v5032_v3 = vpop.f32.mrb[122].mxu1 }
 0x3e6   :  { %v4921_v4 = vpop.f32.mrb[123].mxu0  ;;  %v5033_v5 = vpop.f32.mrb[123].mxu1 }
 0x3e7   :  { %v4237_v6 = vadd.f32 %v4919_v0, %v7391_v59  ;;  %v4922_v7 = vadd.f32 %v4921_v4, %v4920_v2  ;;  %v5034_v8 = vadd.f32 %v5033_v5, %v5032_v3 }
 0x3e9   :  { %v4398_v9 = vadd.f32 %v5031_v1, %v4237_v6  ;;  %v4240_v10 = vadd.f32 %v4922_v7, %v7391_v59 }
 0x3eb   :  { %4440 = vst [vmem:[%s7526_s5 + $0xe0] sm:$0xff] %v4398_v9  ;;  %v4401_v11 = vadd.f32 %v5034_v8, %v4240_v10  ;;  %v4923_v12 = vpop.f32.mrb[124].mxu0  ;;  %v5035_v13 = vpop.f32.mrb[124].mxu1 }
 0x3ec   :  { %v4924_v14 = vpop.f32.mrb[125].mxu0  ;;  %v5036_v15 = vpop.f32.mrb[125].mxu1 }
 0x3ed   :  { %4441 = vst [vmem:[%s7526_s5 + $0xe8] sm:$0xff] %v4401_v11  ;;  %v4925_v16 = vadd.f32 %v4924_v14, %v4923_v12  ;;  %v5037_v17 = vadd.f32 %v5036_v15, %v5035_v13  ;;  %v4926_v18 = vpop.f32.mrb[126].mxu0  ;;  %v5038_v19 = vpop.f32.mrb[126].mxu1 }
 0x3ee   :  { %v4927_v20 = vpop.f32.mrb[127].mxu0  ;;  %v5039_v56 = vpop.f32.mrb[127].mxu1 }
 0x3ef   :  { %v4245_v21 = vadd.f32 %v4925_v16, %v7391_v59  ;;  %v4928_v57 = vadd.f32 %v4927_v20, %v4926_v18  ;;  %v5040_v22 = vadd.f32 %v5039_v56, %v5038_v19 }
 0x3f1   :  { %v4406_v58 = vadd.f32 %v5037_v17, %v4245_v21  ;;  %v4248_v23 = vadd.f32 %v4928_v57, %v7391_v59 }
 0x3f3   :  { %4442 = vst [vmem:[%s7526_s5 + $0xf0] sm:$0xff] %v4406_v58  ;;  %v4409_v24 = vadd.f32 %v5040_v22, %v4248_v23 }
 0x3f5   :  { %4443 = vst [vmem:[%s7526_s5 + $0xf8] sm:$0xff] %v4409_v24 }

</bundles_post_ra>
